<compile_context>
chip_gen: v7x
topology: tpu7x:2x2x1
jax: 0.10.0
libtpu: 0.0.40
codegen_flags: <defaults>
</compile_context>

<pallas_src>
import jax
import jax.numpy as jnp
from jax.experimental import pallas as pl
from jax.experimental.pallas import tpu as pltpu

EPS = 1e-5
NEG_SLOPE = 0.2
LANE = 128
SUBLANE = 8


def _round_up(x, m):
    return ((x + m - 1) // m) * m


def _vmem_limit_bytes():
    """Scoped-VMEM limit with headroom: ~100 MiB on 128 MiB parts (v5e/v6e),
    ~40 MiB on 64 MiB parts (v7x)."""
    cap = 64 * 1024 * 1024
    try:
        cap = int(pltpu.get_tpu_info().vmem_capacity_bytes)
    except Exception:  # conservative fallback if the query is unavailable
        pass
    frac = 0.78 if cap >= 96 * 1024 * 1024 else 0.625
    return max(32 * 1024 * 1024, int(cap * frac))


def _conv_stats_kernel(ee_ref, eex_ref, eo_ref, eox_ref, oe_ref, oo_ref,
                       w_ref, y_ref, stats_ref, acc_ref):
    """Strided 3x3 conv as accumulated MXU dots + per-tile BN partial sums.

    acc_ref: (tile_oh*ow, c_pad) f32 VMEM scratch; c_pad is the 128-lane-dense
    MXU width, but only the first c_out lanes are written back to HBM (bf16).
    """
    t, ow, c_out = y_ref.shape[1], y_ref.shape[2], y_ref.shape[3]
    cin = w_ref.shape[2]

    ee = ee_ref[0]      # (t, ow+1, cin)  even rows / even cols
    eo = eo_ref[0]      # (t, ow+1, cin)  even rows / odd  cols
    oe = oe_ref[0]      # (t, ow+1, cin)  odd  rows / even cols
    oo = oo_ref[0]      # (t, ow+1, cin)  odd  rows / odd  cols

    def lhs(src, rows, c0):
        # (rows, ow+1, cin) -> (rows*ow, cin) tap matrix for the MXU.
        return src[:, c0:c0 + ow, :].reshape(rows * ow, cin)

    # Taps kh in {0, 1}: rows 0..t-1 of the matching parity block.
    for kh in range(2):
        even_col = ee if kh == 0 else oe
        odd_col = eo if kh == 0 else oo
        for kw in range(3):
            src = odd_col if kw == 1 else even_col
            c0 = 1 if kw == 2 else 0
            d = jnp.dot(lhs(src, t, c0), w_ref[kh, kw],
                        preferred_element_type=jnp.float32)
            if kh == 0 and kw == 0:
                acc_ref[...] = d           # first tap initializes the scratch
            else:
                acc_ref[...] += d

    # Taps kh == 2: need even rows 1..t = rows 1..t-1 of the main block plus the
    # single prefetched extra row -> two row-range dots, no concatenation.
    for kw in range(3):
        src = eo if kw == 1 else ee
        srcx = eox_ref if kw == 1 else eex_ref
        c0 = 1 if kw == 2 else 0
        w_tap = w_ref[2, kw]
        if t > 1:
            acc_ref[pl.ds(0, (t - 1) * ow), :] += jnp.dot(
                lhs(src[1:t], t - 1, c0), w_tap,
                preferred_element_type=jnp.float32)
        acc_ref[pl.ds((t - 1) * ow, ow), :] += jnp.dot(
            lhs(srcx[0], 1, c0), w_tap, preferred_element_type=jnp.float32)

    acc = acc_ref[...]
    # BN partials from the exact f32 accumulator; global combine happens
    # outside the grid so batch statistics never become per-tile stats.
    s1 = jnp.sum(acc, axis=0, keepdims=True)
    s2 = jnp.sum(acc * acc, axis=0, keepdims=True)
    stats_ref[0, 0, 0:1, :] = s1[:, :c_out]
    stats_ref[0, 0, 1:2, :] = s2[:, :c_out]
    # Narrow (c_out-wide) bf16 writeback of the conv intermediate.
    y_ref[0] = acc[:, :c_out].astype(y_ref.dtype).reshape(t, ow, c_out)


def _bn_act_kernel(y_ref, scale_ref, shift_ref, o_ref):
    """Streaming normalize (precomputed per-channel scale/shift) + LeakyReLU."""
    z = y_ref[...].astype(jnp.float32) * scale_ref[...] + shift_ref[...]
    o_ref[...] = jnp.where(z >= 0, z, NEG_SLOPE * z)


def down_conv_block(x, weight, gamma, beta, *, stride=2, padding=1,
                    tile_oh=None, nchw_output=True):
    """x: (N, Cin, H, W) f32 (PyTorch NCHW); weight: (Cout, Cin, 3, 3).

    Returns LeakyReLU(BatchNorm2d(Conv2d(x))) with training-mode batch stats.
    Pass nchw_output=False to keep the cheaper NHWC layout downstream.
    """
    if stride != 2 or padding != 1:
        raise NotImplementedError("kernel specialised for k=3, s=2, p=1")
    n, cin, h, w = x.shape
    cout, cin_w, kh_, kw_ = weight.shape
    assert (kh_, kw_) == (3, 3) and cin_w == cin
    oh = (h + 2 * padding - 3) // stride + 1
    ow = (w + 2 * padding - 3) // stride + 1
    c_pad = _round_up(cout, LANE)       # MXU-lane-dense RHS / accumulator width
    c_out = _round_up(cout, SUBLANE)    # narrow HBM width for y / output

    vmem_limit = _vmem_limit_bytes()
    budget = int(vmem_limit * 0.6)      # headroom for Mosaic temporaries

    # ---- pass-1 tile over output rows: biggest tile that fits the budget ----
    if tile_oh is None:
        tile_oh = max(1, 2048 // max(ow, 1))
    tile_oh = max(1, min(tile_oh, oh))

    def p1_bytes(t):
        in_b = 4 * 2 * t * (ow + 1) * cin * 2      # 4 parity streams, dbl-buffered
        ext_b = 2 * 2 * (ow + 1) * cin * 2         # 2 extra-row streams
        w_b = 2 * 9 * cin * c_pad * 2              # bf16 weights
        y_b = 2 * t * ow * c_out * 2               # bf16 y writeback
        st_b = 2 * 2 * c_out * 4
        acc_b = t * ow * c_pad * 4                 # f32 scratch accumulator
        tmp_b = 3 * t * ow * cin * 2 + t * ow * c_pad * 4   # tap LHS + dot temps
        return in_b + ext_b + w_b + y_b + st_b + acc_b + tmp_b

    while tile_oh > 1 and p1_bytes(tile_oh) > budget:
        tile_oh = max(1, tile_oh // 2)

    # Prefer an exact divisor of oh near the target; otherwise keep the large
    # tile and pad output rows (zero-padded rows contribute nothing to BN sums).
    div = tile_oh
    while oh % div:
        div -= 1
    if 2 * div >= tile_oh:
        tile_oh, oh_pad = div, oh
    else:
        oh_pad = _round_up(oh, tile_oh)
    nblk = oh_pad // tile_oh

    # ---- layout prep (single cheap XLA pass, ~1x input bytes; no 9x im2col) ----
    x_nhwc = jnp.transpose(x, (0, 2, 3, 1))
    hp = 2 * (oh_pad + 1)
    wp = 2 * (ow + 1)
    x_sp = jnp.pad(
        x_nhwc,
        ((0, 0), (padding, hp - h - padding), (padding, wp - w - padding), (0, 0)),
    ).astype(jnp.bfloat16)                          # bf16 operands for the MXU
    x_ee = x_sp[:, 0::2, 0::2, :]                   # (n, oh_pad+1, ow+1, cin)
    x_eo = x_sp[:, 0::2, 1::2, :]
    x_oe = x_sp[:, 1::2, 0::2, :]
    x_oo = x_sp[:, 1::2, 1::2, :]

    # (Cout, Cin, 3, 3) -> (3, 3, Cin, c_pad) bf16, kept VMEM-resident.
    w_k = jnp.transpose(weight, (2, 3, 1, 0))
    w_k = jnp.pad(w_k, ((0, 0), (0, 0), (0, 0), (0, c_pad - cout)))
    w_k = w_k.astype(jnp.bfloat16)

    x_main = pl.BlockSpec((1, tile_oh, ow + 1, cin), lambda b, i: (b, i, 0, 0))
    x_next = pl.BlockSpec((1, 1, ow + 1, cin),
                          lambda b, i: (b, (i + 1) * tile_oh, 0, 0))
    cparams = pltpu.CompilerParams(
        dimension_semantics=("parallel", "parallel"),
        vmem_limit_bytes=vmem_limit)

    # ---- pass 1: conv + per-tile BN partials ----
    y, stats = pl.pallas_call(
        _conv_stats_kernel,
        grid=(n, nblk),
        in_specs=[
            x_main, x_next,            # even rows / even cols (+1 extra row)
            x_main, x_next,            # even rows / odd  cols (+1 extra row)
            x_main,                    # odd  rows / even cols
            x_main,                    # odd  rows / odd  cols
            pl.BlockSpec((3, 3, cin, c_pad), lambda b, i: (0, 0, 0, 0)),
        ],
        out_specs=(
            pl.BlockSpec((1, tile_oh, ow, c_out), lambda b, i: (b, i, 0, 0)),
            pl.BlockSpec((1, 1, 2, c_out), lambda b, i: (b, i, 0, 0)),
        ),
        out_shape=(
            jax.ShapeDtypeStruct((n, oh_pad, ow, c_out), jnp.bfloat16),
            jax.ShapeDtypeStruct((n, nblk, 2, c_out), jnp.float32),
        ),
        scratch_shapes=[pltpu.VMEM((tile_oh * ow, c_pad), jnp.float32)],
        compiler_params=cparams,
    )(x_ee, x_ee, x_eo, x_eo, x_oe, x_oo, w_k)

    # ---- tiny global BN combine (O(C) work, keeps stats global/exact) ----
    # TODO(synk): E[x^2]-E[x]^2 in f32 can cancel for huge activations; switch
    # to a centered/Welford combine if this block sits deep in a large network.
    m_total = n * oh * ow              # padded rows are zeros -> contribute nothing
    totals = jnp.sum(stats, axis=(0, 1))                       # (2, c_out)
    mean = totals[0] / m_total
    var = jnp.maximum(totals[1] / m_total - mean * mean, 0.0)  # biased variance
    inv_std = jax.lax.rsqrt(var + EPS)
    gamma_p = jnp.pad(gamma.astype(jnp.float32), (0, c_out - cout))
    beta_p = jnp.pad(beta.astype(jnp.float32), (0, c_out - cout))
    scale = (gamma_p * inv_std).reshape(1, 1, 1, c_out)
    shift = (beta_p - mean * gamma_p * inv_std).reshape(1, 1, 1, c_out)

    # ---- pass 2: streaming normalize + LeakyReLU (own, larger tiling) ----
    tile2 = tile_oh
    for k in range(nblk, 0, -1):
        t2 = k * tile_oh
        if nblk % k == 0 and 2 * t2 * ow * c_out * (2 + 4) <= budget:
            tile2 = t2
            break
    nblk2 = oh_pad // tile2

    out_nhwc = pl.pallas_call(
        _bn_act_kernel,
        grid=(n, nblk2),
        in_specs=[
            pl.BlockSpec((1, tile2, ow, c_out), lambda b, i: (b, i, 0, 0)),
            pl.BlockSpec((1, 1, 1, c_out), lambda b, i: (0, 0, 0, 0)),
            pl.BlockSpec((1, 1, 1, c_out), lambda b, i: (0, 0, 0, 0)),
        ],
        out_specs=pl.BlockSpec((1, tile2, ow, c_out), lambda b, i: (b, i, 0, 0)),
        out_shape=jax.ShapeDtypeStruct((n, oh_pad, ow, c_out), jnp.float32),
        compiler_params=cparams,
    )(y, scale, shift)
    # NOTE: with a bf16 final output this call could alias y's buffer via
    # input_output_aliases={0: 0}; kept f32 (unaliased) for PyTorch parity.

    out_nhwc = out_nhwc[:, :oh, :, :cout]
    if nchw_output:                    # PyTorch layout parity (costs a transpose)
        return jnp.transpose(out_nhwc, (0, 3, 1, 2))
    return out_nhwc


def _reference(x, weight, gamma, beta, *, stride=2, padding=1):
    """Pure-JAX reference: Conv2d -> train-mode BatchNorm2d -> LeakyReLU(0.2)."""
    y = jax.lax.conv_general_dilated(
        x, weight, window_strides=(stride, stride),
        padding=((padding, padding), (padding, padding)),
        dimension_numbers=("NCHW", "OIHW", "NCHW"))
    mean = jnp.mean(y, axis=(0, 2, 3), keepdims=True)
    var = jnp.mean((y - mean) ** 2, axis=(0, 2, 3), keepdims=True)
    z = (y - mean) * jax.lax.rsqrt(var + EPS)
    z = z * gamma.reshape(1, -1, 1, 1) + beta.reshape(1, -1, 1, 1)
    return jnp.where(z >= 0, z, NEG_SLOPE * z)


if __name__ == "__main__":
    key = jax.random.PRNGKey(0)
    k_x, k_w, k_g, k_b = jax.random.split(key, 4)

    N, C_IN, H, W = 2, 4, 16, 16
    C_OUT = 8

    x = jax.random.normal(k_x, (N, C_IN, H, W), dtype=jnp.float32)
    weight = 0.1 * jax.random.normal(k_w, (C_OUT, C_IN, 3, 3), dtype=jnp.float32)
    gamma = 1.0 + 0.01 * jax.random.normal(k_g, (C_OUT,), dtype=jnp.float32)
    beta = 0.01 * jax.random.normal(k_b, (C_OUT,), dtype=jnp.float32)

    out = jax.jit(down_conv_block)(x, weight, gamma, beta)
    jax.block_until_ready(out)
    assert out.shape == (N, C_OUT, H // 2, W // 2), out.shape

    ref = _reference(x, weight, gamma, beta)
    max_err = float(jnp.max(jnp.abs(out - ref)))
    assert max_err < 5e-2, f"max |err| = {max_err}"
    print("KERNEL_OK")
</pallas_src>

<mosaic_0001>
module attributes {stable_mosaic.version = 11 : i64} {
  func.func @_conv_stats_kernel(%arg0: i32, %arg1: i32, %arg2: memref<1x8x9x4xbf16, #tpu.memory_space<vmem>>, %arg3: memref<1x1x9x4xbf16, #tpu.memory_space<vmem>>, %arg4: memref<1x8x9x4xbf16, #tpu.memory_space<vmem>>, %arg5: memref<1x1x9x4xbf16, #tpu.memory_space<vmem>>, %arg6: memref<1x8x9x4xbf16, #tpu.memory_space<vmem>>, %arg7: memref<1x8x9x4xbf16, #tpu.memory_space<vmem>>, %arg8: memref<3x3x4x128xbf16, #tpu.memory_space<vmem>>, %arg9: memref<1x8x8x8xbf16, #tpu.memory_space<vmem>>, %arg10: memref<1x1x2x8xf32, #tpu.memory_space<vmem>>, %arg11: memref<64x128xf32, #tpu.memory_space<vmem>>) attributes {dimension_semantics = [#tpu.dimension_semantics<parallel>, #tpu.dimension_semantics<parallel>], iteration_bounds = array<i64: 2, 1>, scalar_prefetch = 0 : i64, scratch_operands = 1 : i64, tpu.core_type = #tpu.core_type<tc>, window_params = [{transform_indices = @transform_0, window_bounds = array<i64: 1, 8, 9, 4>}, {transform_indices = @transform_1, window_bounds = array<i64: 1, 1, 9, 4>}, {transform_indices = @transform_2, window_bounds = array<i64: 1, 8, 9, 4>}, {transform_indices = @transform_3, window_bounds = array<i64: 1, 1, 9, 4>}, {transform_indices = @transform_4, window_bounds = array<i64: 1, 8, 9, 4>}, {transform_indices = @transform_5, window_bounds = array<i64: 1, 8, 9, 4>}, {pipeline_mode = #tpu.pipeline_mode<synchronous>, transform_indices = @transform_6, window_bounds = array<i64: 3, 3, 4, 128>}, {transform_indices = @transform_7, window_bounds = array<i64: 1, 8, 8, 8>}, {transform_indices = @transform_8, window_bounds = array<i64: 1, 1, 2, 8>}]} {
    %c0 = arith.constant 0 : index
    %c0_0 = arith.constant 0 : index
    %c0_1 = arith.constant 0 : index
    %c0_2 = arith.constant 0 : index
    %0 = vector.load %arg2[%c0, %c0_0, %c0_1, %c0_2] : memref<1x8x9x4xbf16, #tpu.memory_space<vmem>>, vector<1x8x9x4xbf16>
    %1 = vector.shape_cast %0 : vector<1x8x9x4xbf16> to vector<8x9x4xbf16>
    %c0_3 = arith.constant 0 : index
    %c0_4 = arith.constant 0 : index
    %c0_5 = arith.constant 0 : index
    %c0_6 = arith.constant 0 : index
    %2 = vector.load %arg4[%c0_3, %c0_4, %c0_5, %c0_6] : memref<1x8x9x4xbf16, #tpu.memory_space<vmem>>, vector<1x8x9x4xbf16>
    %3 = vector.shape_cast %2 : vector<1x8x9x4xbf16> to vector<8x9x4xbf16>
    %c0_7 = arith.constant 0 : index
    %c0_8 = arith.constant 0 : index
    %c0_9 = arith.constant 0 : index
    %c0_10 = arith.constant 0 : index
    %4 = vector.load %arg6[%c0_7, %c0_8, %c0_9, %c0_10] : memref<1x8x9x4xbf16, #tpu.memory_space<vmem>>, vector<1x8x9x4xbf16>
    %5 = vector.shape_cast %4 : vector<1x8x9x4xbf16> to vector<8x9x4xbf16>
    %c0_11 = arith.constant 0 : index
    %c0_12 = arith.constant 0 : index
    %c0_13 = arith.constant 0 : index
    %c0_14 = arith.constant 0 : index
    %6 = vector.load %arg7[%c0_11, %c0_12, %c0_13, %c0_14] : memref<1x8x9x4xbf16, #tpu.memory_space<vmem>>, vector<1x8x9x4xbf16>
    %7 = vector.shape_cast %6 : vector<1x8x9x4xbf16> to vector<8x9x4xbf16>
    %8 = vector.extract_strided_slice %1 {offsets = [0, 0, 0], sizes = [8, 8, 4], strides = [1, 1, 1]} : vector<8x9x4xbf16> to vector<8x8x4xbf16>
    %9 = vector.shape_cast %8 : vector<8x8x4xbf16> to vector<64x4xbf16>
    %c0_15 = arith.constant 0 : index
    %c0_16 = arith.constant 0 : index
    %c0_17 = arith.constant 0 : index
    %c0_18 = arith.constant 0 : index
    %10 = vector.load %arg8[%c0_15, %c0_16, %c0_17, %c0_18] : memref<3x3x4x128xbf16, #tpu.memory_space<vmem>>, vector<1x1x4x128xbf16>
    %11 = vector.shape_cast %10 : vector<1x1x4x128xbf16> to vector<4x128xbf16>
    %cst = arith.constant dense<0.000000e+00> : vector<64x128xf32>
    %12 = tpu.matmul %9, %11, %cst {dimension_numbers = #tpu.dot_dimension_numbers<[1], [0], [0], [1], [0, 0, 1, 1], [], []>} : vector<64x4xbf16>, vector<4x128xbf16>, vector<64x128xf32> -> vector<64x128xf32>
    %c0_19 = arith.constant 0 : index
    %c0_20 = arith.constant 0 : index
    %13 = vector.load %arg11[%c0_19, %c0_20] : memref<64x128xf32, #tpu.memory_space<vmem>>, vector<64x128xf32>
    tpu.vector_store %arg11[%c0_19, %c0_20], %12 {strides = array<i32>} : memref<64x128xf32, #tpu.memory_space<vmem>>, vector<64x128xf32>,
    %14 = vector.extract_strided_slice %3 {offsets = [0, 0, 0], sizes = [8, 8, 4], strides = [1, 1, 1]} : vector<8x9x4xbf16> to vector<8x8x4xbf16>
    %15 = vector.shape_cast %14 : vector<8x8x4xbf16> to vector<64x4xbf16>
    %c0_21 = arith.constant 0 : index
    %c1 = arith.constant 1 : index
    %c0_22 = arith.constant 0 : index
    %c0_23 = arith.constant 0 : index
    %16 = vector.load %arg8[%c0_21, %c1, %c0_22, %c0_23] : memref<3x3x4x128xbf16, #tpu.memory_space<vmem>>, vector<1x1x4x128xbf16>
    %17 = vector.shape_cast %16 : vector<1x1x4x128xbf16> to vector<4x128xbf16>
    %cst_24 = arith.constant dense<0.000000e+00> : vector<64x128xf32>
    %18 = tpu.matmul %15, %17, %cst_24 {dimension_numbers = #tpu.dot_dimension_numbers<[1], [0], [0], [1], [0, 0, 1, 1], [], []>} : vector<64x4xbf16>, vector<4x128xbf16>, vector<64x128xf32> -> vector<64x128xf32>
    %c0_25 = arith.constant 0 : index
    %c0_26 = arith.constant 0 : index
    %19 = vector.load %arg11[%c0_25, %c0_26] : memref<64x128xf32, #tpu.memory_space<vmem>>, vector<64x128xf32>
    %20 = arith.addf %19, %18 : vector<64x128xf32>
    %c0_27 = arith.constant 0 : index
    %c0_28 = arith.constant 0 : index
    %21 = vector.load %arg11[%c0_27, %c0_28] : memref<64x128xf32, #tpu.memory_space<vmem>>, vector<64x128xf32>
    tpu.vector_store %arg11[%c0_27, %c0_28], %20 {strides = array<i32>} : memref<64x128xf32, #tpu.memory_space<vmem>>, vector<64x128xf32>,
    %22 = vector.extract_strided_slice %1 {offsets = [0, 1, 0], sizes = [8, 8, 4], strides = [1, 1, 1]} : vector<8x9x4xbf16> to vector<8x8x4xbf16>
    %23 = vector.shape_cast %22 : vector<8x8x4xbf16> to vector<64x4xbf16>
    %c0_29 = arith.constant 0 : index
    %c2 = arith.constant 2 : index
    %c0_30 = arith.constant 0 : index
    %c0_31 = arith.constant 0 : index
    %24 = vector.load %arg8[%c0_29, %c2, %c0_30, %c0_31] : memref<3x3x4x128xbf16, #tpu.memory_space<vmem>>, vector<1x1x4x128xbf16>
    %25 = vector.shape_cast %24 : vector<1x1x4x128xbf16> to vector<4x128xbf16>
    %cst_32 = arith.constant dense<0.000000e+00> : vector<64x128xf32>
    %26 = tpu.matmul %23, %25, %cst_32 {dimension_numbers = #tpu.dot_dimension_numbers<[1], [0], [0], [1], [0, 0, 1, 1], [], []>} : vector<64x4xbf16>, vector<4x128xbf16>, vector<64x128xf32> -> vector<64x128xf32>
    %c0_33 = arith.constant 0 : index
    %c0_34 = arith.constant 0 : index
    %27 = vector.load %arg11[%c0_33, %c0_34] : memref<64x128xf32, #tpu.memory_space<vmem>>, vector<64x128xf32>
    %28 = arith.addf %27, %26 : vector<64x128xf32>
    %c0_35 = arith.constant 0 : index
    %c0_36 = arith.constant 0 : index
    %29 = vector.load %arg11[%c0_35, %c0_36] : memref<64x128xf32, #tpu.memory_space<vmem>>, vector<64x128xf32>
    tpu.vector_store %arg11[%c0_35, %c0_36], %28 {strides = array<i32>} : memref<64x128xf32, #tpu.memory_space<vmem>>, vector<64x128xf32>,
    %30 = vector.extract_strided_slice %5 {offsets = [0, 0, 0], sizes = [8, 8, 4], strides = [1, 1, 1]} : vector<8x9x4xbf16> to vector<8x8x4xbf16>
    %31 = vector.shape_cast %30 : vector<8x8x4xbf16> to vector<64x4xbf16>
    %c1_37 = arith.constant 1 : index
    %c0_38 = arith.constant 0 : index
    %c0_39 = arith.constant 0 : index
    %c0_40 = arith.constant 0 : index
    %32 = vector.load %arg8[%c1_37, %c0_38, %c0_39, %c0_40] : memref<3x3x4x128xbf16, #tpu.memory_space<vmem>>, vector<1x1x4x128xbf16>
    %33 = vector.shape_cast %32 : vector<1x1x4x128xbf16> to vector<4x128xbf16>
    %cst_41 = arith.constant dense<0.000000e+00> : vector<64x128xf32>
    %34 = tpu.matmul %31, %33, %cst_41 {dimension_numbers = #tpu.dot_dimension_numbers<[1], [0], [0], [1], [0, 0, 1, 1], [], []>} : vector<64x4xbf16>, vector<4x128xbf16>, vector<64x128xf32> -> vector<64x128xf32>
    %c0_42 = arith.constant 0 : index
    %c0_43 = arith.constant 0 : index
    %35 = vector.load %arg11[%c0_42, %c0_43] : memref<64x128xf32, #tpu.memory_space<vmem>>, vector<64x128xf32>
    %36 = arith.addf %35, %34 : vector<64x128xf32>
    %c0_44 = arith.constant 0 : index
    %c0_45 = arith.constant 0 : index
    %37 = vector.load %arg11[%c0_44, %c0_45] : memref<64x128xf32, #tpu.memory_space<vmem>>, vector<64x128xf32>
    tpu.vector_store %arg11[%c0_44, %c0_45], %36 {strides = array<i32>} : memref<64x128xf32, #tpu.memory_space<vmem>>, vector<64x128xf32>,
    %38 = vector.extract_strided_slice %7 {offsets = [0, 0, 0], sizes = [8, 8, 4], strides = [1, 1, 1]} : vector<8x9x4xbf16> to vector<8x8x4xbf16>
    %39 = vector.shape_cast %38 : vector<8x8x4xbf16> to vector<64x4xbf16>
    %c1_46 = arith.constant 1 : index
    %c1_47 = arith.constant 1 : index
    %c0_48 = arith.constant 0 : index
    %c0_49 = arith.constant 0 : index
    %40 = vector.load %arg8[%c1_46, %c1_47, %c0_48, %c0_49] : memref<3x3x4x128xbf16, #tpu.memory_space<vmem>>, vector<1x1x4x128xbf16>
    %41 = vector.shape_cast %40 : vector<1x1x4x128xbf16> to vector<4x128xbf16>
    %cst_50 = arith.constant dense<0.000000e+00> : vector<64x128xf32>
    %42 = tpu.matmul %39, %41, %cst_50 {dimension_numbers = #tpu.dot_dimension_numbers<[1], [0], [0], [1], [0, 0, 1, 1], [], []>} : vector<64x4xbf16>, vector<4x128xbf16>, vector<64x128xf32> -> vector<64x128xf32>
    %c0_51 = arith.constant 0 : index
    %c0_52 = arith.constant 0 : index
    %43 = vector.load %arg11[%c0_51, %c0_52] : memref<64x128xf32, #tpu.memory_space<vmem>>, vector<64x128xf32>
    %44 = arith.addf %43, %42 : vector<64x128xf32>
    %c0_53 = arith.constant 0 : index
    %c0_54 = arith.constant 0 : index
    %45 = vector.load %arg11[%c0_53, %c0_54] : memref<64x128xf32, #tpu.memory_space<vmem>>, vector<64x128xf32>
    tpu.vector_store %arg11[%c0_53, %c0_54], %44 {strides = array<i32>} : memref<64x128xf32, #tpu.memory_space<vmem>>, vector<64x128xf32>,
    %46 = vector.extract_strided_slice %5 {offsets = [0, 1, 0], sizes = [8, 8, 4], strides = [1, 1, 1]} : vector<8x9x4xbf16> to vector<8x8x4xbf16>
    %47 = vector.shape_cast %46 : vector<8x8x4xbf16> to vector<64x4xbf16>
    %c1_55 = arith.constant 1 : index
    %c2_56 = arith.constant 2 : index
    %c0_57 = arith.constant 0 : index
    %c0_58 = arith.constant 0 : index
    %48 = vector.load %arg8[%c1_55, %c2_56, %c0_57, %c0_58] : memref<3x3x4x128xbf16, #tpu.memory_space<vmem>>, vector<1x1x4x128xbf16>
    %49 = vector.shape_cast %48 : vector<1x1x4x128xbf16> to vector<4x128xbf16>
    %cst_59 = arith.constant dense<0.000000e+00> : vector<64x128xf32>
    %50 = tpu.matmul %47, %49, %cst_59 {dimension_numbers = #tpu.dot_dimension_numbers<[1], [0], [0], [1], [0, 0, 1, 1], [], []>} : vector<64x4xbf16>, vector<4x128xbf16>, vector<64x128xf32> -> vector<64x128xf32>
    %c0_60 = arith.constant 0 : index
    %c0_61 = arith.constant 0 : index
    %51 = vector.load %arg11[%c0_60, %c0_61] : memref<64x128xf32, #tpu.memory_space<vmem>>, vector<64x128xf32>
    %52 = arith.addf %51, %50 : vector<64x128xf32>
    %c0_62 = arith.constant 0 : index
    %c0_63 = arith.constant 0 : index
    %53 = vector.load %arg11[%c0_62, %c0_63] : memref<64x128xf32, #tpu.memory_space<vmem>>, vector<64x128xf32>
    tpu.vector_store %arg11[%c0_62, %c0_63], %52 {strides = array<i32>} : memref<64x128xf32, #tpu.memory_space<vmem>>, vector<64x128xf32>,
    %c2_64 = arith.constant 2 : index
    %c0_65 = arith.constant 0 : index
    %c0_66 = arith.constant 0 : index
    %c0_67 = arith.constant 0 : index
    %54 = vector.load %arg8[%c2_64, %c0_65, %c0_66, %c0_67] : memref<3x3x4x128xbf16, #tpu.memory_space<vmem>>, vector<1x1x4x128xbf16>
    %55 = vector.shape_cast %54 : vector<1x1x4x128xbf16> to vector<4x128xbf16>
    %c0_68 = arith.constant 0 : index
    %c0_69 = arith.constant 0 : index
    %56 = vector.load %arg11[%c0_68, %c0_69] : memref<64x128xf32, #tpu.memory_space<vmem>>, vector<56x128xf32>
    %57 = vector.extract_strided_slice %1 {offsets = [1, 0, 0], sizes = [7, 9, 4], strides = [1, 1, 1]} : vector<8x9x4xbf16> to vector<7x9x4xbf16>
    %58 = vector.extract_strided_slice %57 {offsets = [0, 0, 0], sizes = [7, 8, 4], strides = [1, 1, 1]} : vector<7x9x4xbf16> to vector<7x8x4xbf16>
    %59 = vector.shape_cast %58 : vector<7x8x4xbf16> to vector<56x4xbf16>
    %cst_70 = arith.constant dense<0.000000e+00> : vector<56x128xf32>
    %60 = tpu.matmul %59, %55, %cst_70 {dimension_numbers = #tpu.dot_dimension_numbers<[1], [0], [0], [1], [0, 0, 1, 1], [], []>} : vector<56x4xbf16>, vector<4x128xbf16>, vector<56x128xf32> -> vector<56x128xf32>
    %61 = arith.addf %56, %60 : vector<56x128xf32>
    %c0_71 = arith.constant 0 : index
    %c0_72 = arith.constant 0 : index
    %62 = vector.load %arg11[%c0_71, %c0_72] : memref<64x128xf32, #tpu.memory_space<vmem>>, vector<56x128xf32>
    tpu.vector_store %arg11[%c0_71, %c0_72], %61 {strides = array<i32>} : memref<64x128xf32, #tpu.memory_space<vmem>>, vector<56x128xf32>,
    %c56 = arith.constant 56 : index
    %c0_73 = arith.constant 0 : index
    %63 = vector.load %arg11[%c56, %c0_73] : memref<64x128xf32, #tpu.memory_space<vmem>>, vector<8x128xf32>
    %c0_74 = arith.constant 0 : index
    %c0_75 = arith.constant 0 : index
    %c0_76 = arith.constant 0 : index
    %c0_77 = arith.constant 0 : index
    %64 = vector.load %arg3[%c0_74, %c0_75, %c0_76, %c0_77] : memref<1x1x9x4xbf16, #tpu.memory_space<vmem>>, vector<1x1x9x4xbf16>
    %65 = vector.shape_cast %64 : vector<1x1x9x4xbf16> to vector<1x9x4xbf16>
    %66 = vector.extract_strided_slice %65 {offsets = [0, 0, 0], sizes = [1, 8, 4], strides = [1, 1, 1]} : vector<1x9x4xbf16> to vector<1x8x4xbf16>
    %67 = vector.shape_cast %66 : vector<1x8x4xbf16> to vector<8x4xbf16>
    %cst_78 = arith.constant dense<0.000000e+00> : vector<8x128xf32>
    %68 = tpu.matmul %67, %55, %cst_78 {dimension_numbers = #tpu.dot_dimension_numbers<[1], [0], [0], [1], [0, 0, 1, 1], [], []>} : vector<8x4xbf16>, vector<4x128xbf16>, vector<8x128xf32> -> vector<8x128xf32>
    %69 = arith.addf %63, %68 : vector<8x128xf32>
    %c56_79 = arith.constant 56 : index
    %c0_80 = arith.constant 0 : index
    %70 = vector.load %arg11[%c56_79, %c0_80] : memref<64x128xf32, #tpu.memory_space<vmem>>, vector<8x128xf32>
    tpu.vector_store %arg11[%c56_79, %c0_80], %69 {strides = array<i32>} : memref<64x128xf32, #tpu.memory_space<vmem>>, vector<8x128xf32>,
    %c2_81 = arith.constant 2 : index
    %c1_82 = arith.constant 1 : index
    %c0_83 = arith.constant 0 : index
    %c0_84 = arith.constant 0 : index
    %71 = vector.load %arg8[%c2_81, %c1_82, %c0_83, %c0_84] : memref<3x3x4x128xbf16, #tpu.memory_space<vmem>>, vector<1x1x4x128xbf16>
    %72 = vector.shape_cast %71 : vector<1x1x4x128xbf16> to vector<4x128xbf16>
    %c0_85 = arith.constant 0 : index
    %c0_86 = arith.constant 0 : index
    %73 = vector.load %arg11[%c0_85, %c0_86] : memref<64x128xf32, #tpu.memory_space<vmem>>, vector<56x128xf32>
    %74 = vector.extract_strided_slice %3 {offsets = [1, 0, 0], sizes = [7, 9, 4], strides = [1, 1, 1]} : vector<8x9x4xbf16> to vector<7x9x4xbf16>
    %75 = vector.extract_strided_slice %74 {offsets = [0, 0, 0], sizes = [7, 8, 4], strides = [1, 1, 1]} : vector<7x9x4xbf16> to vector<7x8x4xbf16>
    %76 = vector.shape_cast %75 : vector<7x8x4xbf16> to vector<56x4xbf16>
    %cst_87 = arith.constant dense<0.000000e+00> : vector<56x128xf32>
    %77 = tpu.matmul %76, %72, %cst_87 {dimension_numbers = #tpu.dot_dimension_numbers<[1], [0], [0], [1], [0, 0, 1, 1], [], []>} : vector<56x4xbf16>, vector<4x128xbf16>, vector<56x128xf32> -> vector<56x128xf32>
    %78 = arith.addf %73, %77 : vector<56x128xf32>
    %c0_88 = arith.constant 0 : index
    %c0_89 = arith.constant 0 : index
    %79 = vector.load %arg11[%c0_88, %c0_89] : memref<64x128xf32, #tpu.memory_space<vmem>>, vector<56x128xf32>
    tpu.vector_store %arg11[%c0_88, %c0_89], %78 {strides = array<i32>} : memref<64x128xf32, #tpu.memory_space<vmem>>, vector<56x128xf32>,
    %c56_90 = arith.constant 56 : index
    %c0_91 = arith.constant 0 : index
    %80 = vector.load %arg11[%c56_90, %c0_91] : memref<64x128xf32, #tpu.memory_space<vmem>>, vector<8x128xf32>
    %c0_92 = arith.constant 0 : index
    %c0_93 = arith.constant 0 : index
    %c0_94 = arith.constant 0 : index
    %c0_95 = arith.constant 0 : index
    %81 = vector.load %arg5[%c0_92, %c0_93, %c0_94, %c0_95] : memref<1x1x9x4xbf16, #tpu.memory_space<vmem>>, vector<1x1x9x4xbf16>
    %82 = vector.shape_cast %81 : vector<1x1x9x4xbf16> to vector<1x9x4xbf16>
    %83 = vector.extract_strided_slice %82 {offsets = [0, 0, 0], sizes = [1, 8, 4], strides = [1, 1, 1]} : vector<1x9x4xbf16> to vector<1x8x4xbf16>
    %84 = vector.shape_cast %83 : vector<1x8x4xbf16> to vector<8x4xbf16>
    %cst_96 = arith.constant dense<0.000000e+00> : vector<8x128xf32>
    %85 = tpu.matmul %84, %72, %cst_96 {dimension_numbers = #tpu.dot_dimension_numbers<[1], [0], [0], [1], [0, 0, 1, 1], [], []>} : vector<8x4xbf16>, vector<4x128xbf16>, vector<8x128xf32> -> vector<8x128xf32>
    %86 = arith.addf %80, %85 : vector<8x128xf32>
    %c56_97 = arith.constant 56 : index
    %c0_98 = arith.constant 0 : index
    %87 = vector.load %arg11[%c56_97, %c0_98] : memref<64x128xf32, #tpu.memory_space<vmem>>, vector<8x128xf32>
    tpu.vector_store %arg11[%c56_97, %c0_98], %86 {strides = array<i32>} : memref<64x128xf32, #tpu.memory_space<vmem>>, vector<8x128xf32>,
    %c2_99 = arith.constant 2 : index
    %c2_100 = arith.constant 2 : index
    %c0_101 = arith.constant 0 : index
    %c0_102 = arith.constant 0 : index
    %88 = vector.load %arg8[%c2_99, %c2_100, %c0_101, %c0_102] : memref<3x3x4x128xbf16, #tpu.memory_space<vmem>>, vector<1x1x4x128xbf16>
    %89 = vector.shape_cast %88 : vector<1x1x4x128xbf16> to vector<4x128xbf16>
    %c0_103 = arith.constant 0 : index
    %c0_104 = arith.constant 0 : index
    %90 = vector.load %arg11[%c0_103, %c0_104] : memref<64x128xf32, #tpu.memory_space<vmem>>, vector<56x128xf32>
    %91 = vector.extract_strided_slice %1 {offsets = [1, 0, 0], sizes = [7, 9, 4], strides = [1, 1, 1]} : vector<8x9x4xbf16> to vector<7x9x4xbf16>
    %92 = vector.extract_strided_slice %91 {offsets = [0, 1, 0], sizes = [7, 8, 4], strides = [1, 1, 1]} : vector<7x9x4xbf16> to vector<7x8x4xbf16>
    %93 = vector.shape_cast %92 : vector<7x8x4xbf16> to vector<56x4xbf16>
    %cst_105 = arith.constant dense<0.000000e+00> : vector<56x128xf32>
    %94 = tpu.matmul %93, %89, %cst_105 {dimension_numbers = #tpu.dot_dimension_numbers<[1], [0], [0], [1], [0, 0, 1, 1], [], []>} : vector<56x4xbf16>, vector<4x128xbf16>, vector<56x128xf32> -> vector<56x128xf32>
    %95 = arith.addf %90, %94 : vector<56x128xf32>
    %c0_106 = arith.constant 0 : index
    %c0_107 = arith.constant 0 : index
    %96 = vector.load %arg11[%c0_106, %c0_107] : memref<64x128xf32, #tpu.memory_space<vmem>>, vector<56x128xf32>
    tpu.vector_store %arg11[%c0_106, %c0_107], %95 {strides = array<i32>} : memref<64x128xf32, #tpu.memory_space<vmem>>, vector<56x128xf32>,
    %c56_108 = arith.constant 56 : index
    %c0_109 = arith.constant 0 : index
    %97 = vector.load %arg11[%c56_108, %c0_109] : memref<64x128xf32, #tpu.memory_space<vmem>>, vector<8x128xf32>
    %c0_110 = arith.constant 0 : index
    %c0_111 = arith.constant 0 : index
    %c0_112 = arith.constant 0 : index
    %c0_113 = arith.constant 0 : index
    %98 = vector.load %arg3[%c0_110, %c0_111, %c0_112, %c0_113] : memref<1x1x9x4xbf16, #tpu.memory_space<vmem>>, vector<1x1x9x4xbf16>
    %99 = vector.shape_cast %98 : vector<1x1x9x4xbf16> to vector<1x9x4xbf16>
    %100 = vector.extract_strided_slice %99 {offsets = [0, 1, 0], sizes = [1, 8, 4], strides = [1, 1, 1]} : vector<1x9x4xbf16> to vector<1x8x4xbf16>
    %101 = vector.shape_cast %100 : vector<1x8x4xbf16> to vector<8x4xbf16>
    %cst_114 = arith.constant dense<0.000000e+00> : vector<8x128xf32>
    %102 = tpu.matmul %101, %89, %cst_114 {dimension_numbers = #tpu.dot_dimension_numbers<[1], [0], [0], [1], [0, 0, 1, 1], [], []>} : vector<8x4xbf16>, vector<4x128xbf16>, vector<8x128xf32> -> vector<8x128xf32>
    %103 = arith.addf %97, %102 : vector<8x128xf32>
    %c56_115 = arith.constant 56 : index
    %c0_116 = arith.constant 0 : index
    %104 = vector.load %arg11[%c56_115, %c0_116] : memref<64x128xf32, #tpu.memory_space<vmem>>, vector<8x128xf32>
    tpu.vector_store %arg11[%c56_115, %c0_116], %103 {strides = array<i32>} : memref<64x128xf32, #tpu.memory_space<vmem>>, vector<8x128xf32>,
    %c0_117 = arith.constant 0 : index
    %c0_118 = arith.constant 0 : index
    %105 = vector.load %arg11[%c0_117, %c0_118] : memref<64x128xf32, #tpu.memory_space<vmem>>, vector<64x128xf32>
    %cst_119 = arith.constant dense<0.000000e+00> : vector<128xf32>
    %106 = vector.multi_reduction <add>, %105, %cst_119 [0] : vector<64x128xf32> to vector<128xf32>
    %107 = vector.shape_cast %106 : vector<128xf32> to vector<1x128xf32>
    %108 = arith.mulf %105, %105 : vector<64x128xf32>
    %cst_120 = arith.constant dense<0.000000e+00> : vector<128xf32>
    %109 = vector.multi_reduction <add>, %108, %cst_120 [0] : vector<64x128xf32> to vector<128xf32>
    %110 = vector.shape_cast %109 : vector<128xf32> to vector<1x128xf32>
    %111 = vector.extract_strided_slice %107 {offsets = [0, 0], sizes = [1, 8], strides = [1, 1]} : vector<1x128xf32> to vector<1x8xf32>
    %c0_121 = arith.constant 0 : index
    %c0_122 = arith.constant 0 : index
    %c0_123 = arith.constant 0 : index
    %c0_124 = arith.constant 0 : index
    %112 = vector.load %arg10[%c0_121, %c0_122, %c0_123, %c0_124] : memref<1x1x2x8xf32, #tpu.memory_space<vmem>>, vector<1x1x1x8xf32>
    %113 = vector.shape_cast %112 : vector<1x1x1x8xf32> to vector<1x8xf32>
    %114 = vector.shape_cast %111 : vector<1x8xf32> to vector<1x1x1x8xf32>
    tpu.vector_store %arg10[%c0_121, %c0_122, %c0_123, %c0_124], %114 {strides = array<i32>} : memref<1x1x2x8xf32, #tpu.memory_space<vmem>>, vector<1x1x1x8xf32>,
    %115 = vector.extract_strided_slice %110 {offsets = [0, 0], sizes = [1, 8], strides = [1, 1]} : vector<1x128xf32> to vector<1x8xf32>
    %c0_125 = arith.constant 0 : index
    %c0_126 = arith.constant 0 : index
    %c1_127 = arith.constant 1 : index
    %c0_128 = arith.constant 0 : index
    %116 = vector.load %arg10[%c0_125, %c0_126, %c1_127, %c0_128] : memref<1x1x2x8xf32, #tpu.memory_space<vmem>>, vector<1x1x1x8xf32>
    %117 = vector.shape_cast %116 : vector<1x1x1x8xf32> to vector<1x8xf32>
    %118 = vector.shape_cast %115 : vector<1x8xf32> to vector<1x1x1x8xf32>
    tpu.vector_store %arg10[%c0_125, %c0_126, %c1_127, %c0_128], %118 {strides = array<i32>} : memref<1x1x2x8xf32, #tpu.memory_space<vmem>>, vector<1x1x1x8xf32>,
    %119 = vector.extract_strided_slice %105 {offsets = [0, 0], sizes = [64, 8], strides = [1, 1]} : vector<64x128xf32> to vector<64x8xf32>
    %120 = arith.truncf %119 : vector<64x8xf32> to vector<64x8xbf16>
    %121 = vector.shape_cast %120 : vector<64x8xbf16> to vector<8x8x8xbf16>
    %c0_129 = arith.constant 0 : index
    %c0_130 = arith.constant 0 : index
    %c0_131 = arith.constant 0 : index
    %c0_132 = arith.constant 0 : index
    %122 = vector.load %arg9[%c0_129, %c0_130, %c0_131, %c0_132] : memref<1x8x8x8xbf16, #tpu.memory_space<vmem>>, vector<1x8x8x8xbf16>
    %123 = vector.shape_cast %122 : vector<1x8x8x8xbf16> to vector<8x8x8xbf16>
    %124 = vector.shape_cast %121 : vector<8x8x8xbf16> to vector<1x8x8x8xbf16>
    tpu.vector_store %arg9[%c0_129, %c0_130, %c0_131, %c0_132], %124 {strides = array<i32>} : memref<1x8x8x8xbf16, #tpu.memory_space<vmem>>, vector<1x8x8x8xbf16>,
    return
  }
  func.func @transform_0(%arg0: i32, %arg1: i32) -> (i32, i32, i32, i32) {
    %c0_i32 = arith.constant 0 : i32
    %c0_i32_0 = arith.constant 0 : i32
    %c0_i32_1 = arith.constant 0 : i32
    return %arg0, %arg1, %c0_i32, %c0_i32_0 : i32, i32, i32, i32
  }
  func.func @transform_1(%arg0: i32, %arg1: i32) -> (i32, i32, i32, i32) {
    %c1_i32 = arith.constant 1 : i32
    %0 = arith.addi %arg1, %c1_i32 : i32
    %c8_i32 = arith.constant 8 : i32
    %1 = arith.muli %0, %c8_i32 : i32
    %c0_i32 = arith.constant 0 : i32
    %c0_i32_0 = arith.constant 0 : i32
    %c0_i32_1 = arith.constant 0 : i32
    return %arg0, %1, %c0_i32, %c0_i32_0 : i32, i32, i32, i32
  }
  func.func @transform_2(%arg0: i32, %arg1: i32) -> (i32, i32, i32, i32) {
    %c0_i32 = arith.constant 0 : i32
    %c0_i32_0 = arith.constant 0 : i32
    %c0_i32_1 = arith.constant 0 : i32
    return %arg0, %arg1, %c0_i32, %c0_i32_0 : i32, i32, i32, i32
  }
  func.func @transform_3(%arg0: i32, %arg1: i32) -> (i32, i32, i32, i32) {
    %c1_i32 = arith.constant 1 : i32
    %0 = arith.addi %arg1, %c1_i32 : i32
    %c8_i32 = arith.constant 8 : i32
    %1 = arith.muli %0, %c8_i32 : i32
    %c0_i32 = arith.constant 0 : i32
    %c0_i32_0 = arith.constant 0 : i32
    %c0_i32_1 = arith.constant 0 : i32
    return %arg0, %1, %c0_i32, %c0_i32_0 : i32, i32, i32, i32
  }
  func.func @transform_4(%arg0: i32, %arg1: i32) -> (i32, i32, i32, i32) {
    %c0_i32 = arith.constant 0 : i32
    %c0_i32_0 = arith.constant 0 : i32
    %c0_i32_1 = arith.constant 0 : i32
    return %arg0, %arg1, %c0_i32, %c0_i32_0 : i32, i32, i32, i32
  }
  func.func @transform_5(%arg0: i32, %arg1: i32) -> (i32, i32, i32, i32) {
    %c0_i32 = arith.constant 0 : i32
    %c0_i32_0 = arith.constant 0 : i32
    %c0_i32_1 = arith.constant 0 : i32
    return %arg0, %arg1, %c0_i32, %c0_i32_0 : i32, i32, i32, i32
  }
  func.func @transform_6(%arg0: i32, %arg1: i32) -> (i32, i32, i32, i32) {
    %c0_i32 = arith.constant 0 : i32
    %c0_i32_0 = arith.constant 0 : i32
    %c0_i32_1 = arith.constant 0 : i32
    %c0_i32_2 = arith.constant 0 : i32
    %c0_i32_3 = arith.constant 0 : i32
    return %c0_i32, %c0_i32_0, %c0_i32_1, %c0_i32_2 : i32, i32, i32, i32
  }
  func.func @transform_7(%arg0: i32, %arg1: i32) -> (i32, i32, i32, i32) {
    %c0_i32 = arith.constant 0 : i32
    %c0_i32_0 = arith.constant 0 : i32
    %c0_i32_1 = arith.constant 0 : i32
    return %arg0, %arg1, %c0_i32, %c0_i32_0 : i32, i32, i32, i32
  }
  func.func @transform_8(%arg0: i32, %arg1: i32) -> (i32, i32, i32, i32) {
    %c0_i32 = arith.constant 0 : i32
    %c0_i32_0 = arith.constant 0 : i32
    %c0_i32_1 = arith.constant 0 : i32
    return %arg0, %arg1, %c0_i32, %c0_i32_0 : i32, i32, i32, i32
  }
}

module attributes {stable_mosaic.version = 11 : i64} {
  func.func @_bn_act_kernel(%arg0: i32, %arg1: i32, %arg2: memref<1x8x8x8xbf16, #tpu.memory_space<vmem>>, %arg3: memref<1x1x1x8xf32, #tpu.memory_space<vmem>>, %arg4: memref<1x1x1x8xf32, #tpu.memory_space<vmem>>, %arg5: memref<1x8x8x8xf32, #tpu.memory_space<vmem>>) attributes {dimension_semantics = [#tpu.dimension_semantics<parallel>, #tpu.dimension_semantics<parallel>], iteration_bounds = array<i64: 2, 1>, scalar_prefetch = 0 : i64, scratch_operands = 0 : i64, tpu.core_type = #tpu.core_type<tc>, window_params = [{transform_indices = @transform_0, window_bounds = array<i64: 1, 8, 8, 8>}, {pipeline_mode = #tpu.pipeline_mode<synchronous>, transform_indices = @transform_1, window_bounds = array<i64: 1, 1, 1, 8>}, {pipeline_mode = #tpu.pipeline_mode<synchronous>, transform_indices = @transform_2, window_bounds = array<i64: 1, 1, 1, 8>}, {transform_indices = @transform_3, window_bounds = array<i64: 1, 8, 8, 8>}]} {
    %c0 = arith.constant 0 : index
    %c0_0 = arith.constant 0 : index
    %c0_1 = arith.constant 0 : index
    %c0_2 = arith.constant 0 : index
    %0 = vector.load %arg2[%c0, %c0_0, %c0_1, %c0_2] : memref<1x8x8x8xbf16, #tpu.memory_space<vmem>>, vector<1x8x8x8xbf16>
    %1 = arith.extf %0 : vector<1x8x8x8xbf16> to vector<1x8x8x8xf32>
    %c0_3 = arith.constant 0 : index
    %c0_4 = arith.constant 0 : index
    %c0_5 = arith.constant 0 : index
    %c0_6 = arith.constant 0 : index
    %2 = vector.load %arg3[%c0_3, %c0_4, %c0_5, %c0_6] : memref<1x1x1x8xf32, #tpu.memory_space<vmem>>, vector<1x1x1x8xf32>
    %3 = vector.broadcast %2 : vector<1x1x1x8xf32> to vector<1x8x8x8xf32>
    %4 = arith.mulf %1, %3 : vector<1x8x8x8xf32>
    %c0_7 = arith.constant 0 : index
    %c0_8 = arith.constant 0 : index
    %c0_9 = arith.constant 0 : index
    %c0_10 = arith.constant 0 : index
    %5 = vector.load %arg4[%c0_7, %c0_8, %c0_9, %c0_10] : memref<1x1x1x8xf32, #tpu.memory_space<vmem>>, vector<1x1x1x8xf32>
    %6 = vector.broadcast %5 : vector<1x1x1x8xf32> to vector<1x8x8x8xf32>
    %7 = arith.addf %4, %6 : vector<1x8x8x8xf32>
    %cst = arith.constant 0.000000e+00 : f32
    %8 = vector.broadcast %cst : f32 to vector<1x8x8x8xf32>
    %9 = arith.cmpf oge, %7, %8 : vector<1x8x8x8xf32>
    %cst_11 = arith.constant 2.000000e-01 : f32
    %10 = vector.broadcast %cst_11 : f32 to vector<1x8x8x8xf32>
    %11 = arith.mulf %10, %7 : vector<1x8x8x8xf32>
    %12 = arith.select %9, %7, %11 : vector<1x8x8x8xi1>, vector<1x8x8x8xf32>
    %c0_12 = arith.constant 0 : index
    %c0_13 = arith.constant 0 : index
    %c0_14 = arith.constant 0 : index
    %c0_15 = arith.constant 0 : index
    %13 = vector.load %arg5[%c0_12, %c0_13, %c0_14, %c0_15] : memref<1x8x8x8xf32, #tpu.memory_space<vmem>>, vector<1x8x8x8xf32>
    tpu.vector_store %arg5[%c0_12, %c0_13, %c0_14, %c0_15], %12 {strides = array<i32>} : memref<1x8x8x8xf32, #tpu.memory_space<vmem>>, vector<1x8x8x8xf32>,
    return
  }
  func.func @transform_0(%arg0: i32, %arg1: i32) -> (i32, i32, i32, i32) {
    %c0_i32 = arith.constant 0 : i32
    %c0_i32_0 = arith.constant 0 : i32
    %c0_i32_1 = arith.constant 0 : i32
    return %arg0, %arg1, %c0_i32, %c0_i32_0 : i32, i32, i32, i32
  }
  func.func @transform_1(%arg0: i32, %arg1: i32) -> (i32, i32, i32, i32) {
    %c0_i32 = arith.constant 0 : i32
    %c0_i32_0 = arith.constant 0 : i32
    %c0_i32_1 = arith.constant 0 : i32
    %c0_i32_2 = arith.constant 0 : i32
    %c0_i32_3 = arith.constant 0 : i32
    return %c0_i32, %c0_i32_0, %c0_i32_1, %c0_i32_2 : i32, i32, i32, i32
  }
  func.func @transform_2(%arg0: i32, %arg1: i32) -> (i32, i32, i32, i32) {
    %c0_i32 = arith.constant 0 : i32
    %c0_i32_0 = arith.constant 0 : i32
    %c0_i32_1 = arith.constant 0 : i32
    %c0_i32_2 = arith.constant 0 : i32
    %c0_i32_3 = arith.constant 0 : i32
    return %c0_i32, %c0_i32_0, %c0_i32_1, %c0_i32_2 : i32, i32, i32, i32
  }
  func.func @transform_3(%arg0: i32, %arg1: i32) -> (i32, i32, i32, i32) {
    %c0_i32 = arith.constant 0 : i32
    %c0_i32_0 = arith.constant 0 : i32
    %c0_i32_1 = arith.constant 0 : i32
    return %arg0, %arg1, %c0_i32, %c0_i32_0 : i32, i32, i32, i32
  }
}

</mosaic_0001>

<bundles_post_ra>
// kernel: down_conv_block.3
= control target key start
LH: loop header
LB: loop body
LE: loop exit
PB: predicated region body
PF: predicated region fallthrough
CT: control target
= control target key end

     0   :  { %s478_s12 = smov 0   ;;  %s480_s13 = smov 0   ;;  %s539_s0 = inlined_call_operand.vmem [shape: bf16[2,8,8,8], index: 0, kind: input, shape index: {}]   ;;  %s540_s1 = inlined_call_operand.vmem [shape: f32[1,1,1,8], index: 1, kind: input, shape index: {}]   ;;  %s541_s2 = inlined_call_operand.vmem [shape: f32[1,1,1,8], index: 2, kind: input, shape index: {}]   ;;  %s542_s3 = inlined_call_operand.vmem [shape: f32[2,8,8,8], index: 3, kind: output, shape index: {}]  }
   0x1   :  { %s482_s14 = smov 0  }
   0x2 LB: > { %s25_s15 = sadd.s32 1, %s452_s13  ;;  %p380_p0 = scmp.ge.s32.totalorder %s456_s14, 1  ;;  %s456_s14 = sphi %s482_s14, %s13_s14   ;;  %s452_s13 = sphi %s480_s13, %s544_s13   ;;  %s448_s12 = sphi %s478_s12, %s543_s12  }
   0x3   : > { %p27_p1 = scmp.ge.s32.totalorder %s25_s15, 2  ;;  %p158_p2 = scmp.lt.s32.totalorder %s456_s14, 3 }
   0x5   : > { %s546_s15 = smov (%p27_p1, %s25_s15), 0  ;;  %p159_p3 = pnand %p380_p0, %p158_p2 }
   0x6   : > { %p191_p4 = scmp.lt.s32.totalorder (!%p159_p3), %s448_s12, 1  ;;  %v385_v0 = vld [vmem:[%s540_s1] ss:$0 sm:$0xff] (!%p159_p3)  ;;  %vm280_vm0 = vcmask (!%p159_p3), 64512  }
   0x7   : > { %162 = sbr.rel (%p159_p3) target bundleno = 33 (0x21), region = 32  ;;  %v386_v9 = vld [vmem:[%s541_s2] ss:$0 sm:$0xff] (!%p159_p3) }
   0xe   : > { %s548_s12 = smov (!%p191_p4, %s448_s12), 1 }
   0xf   : > { %s389_s16 = sshll.u32 %s548_s12, 5  ;;  %s390_s24 = sshll.u32 %s548_s12, 6 }
  0x10   : > { %s198_s19 = scalar_lea.vmem %s539_s0, %s389_s16  ;;  %s512_s27 = scalar_lea.vmem %s542_s3, %s390_s24 }
  0x11   : > { %v392_v1 = vld [vmem:[%s198_s19] sm:$0xff]   ;;  %v407_v2 = vld [vmem:[%s198_s19 + $0x8] sm:$0xff]   ;;  %v408_v3 = vld [vmem:[%s198_s19 + $0x10] sm:$0xff]  }
  0x12   : > { %v393_v4 = vunpack.c.l.bf16 %v392_v1  ;;  %v394_v5 = vunpack.c.h.bf16 %v392_v1  ;;  %v397_v6 = vunpack.c.l.bf16 %v407_v2  ;;  %v398_v7 = vunpack.c.h.bf16 %v407_v2  ;;  %v409_v8 = vld [vmem:[%s198_s19 + $0x18] sm:$0xff]  }
  0x13   : > { %v401_v10 = vunpack.c.l.bf16 %v408_v3  ;;  %v402_v11 = vunpack.c.h.bf16 %v408_v3  ;;  %v405_v12 = vunpack.c.l.bf16 %v409_v8  ;;  %v406_v13 = vunpack.c.h.bf16 %v409_v8 }
  0x14   : > { %v233_v14 = vmul.f32 %v393_v4, %v385_v0  ;;  %v234_v15 = vmul.f32 %v394_v5, %v385_v0  ;;  %v235_v16 = vmul.f32 %v397_v6, %v385_v0  ;;  %v236_v17 = vmul.f32 %v398_v7, %v385_v0 }
  0x15   : > { %v237_v18 = vmul.f32 %v401_v10, %v385_v0  ;;  %v238_v19 = vmul.f32 %v402_v11, %v385_v0  ;;  %v239_v20 = vmul.f32 %v405_v12, %v385_v0  ;;  %v240_v21 = vmul.f32 %v406_v13, %v385_v0 }
  0x16   : > { %v248_v22 = vadd.f32 %v386_v9, %v233_v14  ;;  %v249_v23 = vadd.f32 %v386_v9, %v234_v15  ;;  %v250_v24 = vadd.f32 %v386_v9, %v235_v16  ;;  %v251_v25 = vadd.f32 %v386_v9, %v236_v17 }
  0x17   : > { %v252_v26 = vadd.f32 %v386_v9, %v237_v18  ;;  %v253_v27 = vadd.f32 %v386_v9, %v238_v19  ;;  %v254_v28 = vadd.f32 %v386_v9, %v239_v20  ;;  %v255_v29 = vadd.f32 %v386_v9, %v240_v21 }
  0x18   : > { %vm256_vm1 = vcmp.ge.f32.partialorder %v248_v22, 0.0  ;;  %v264_v30 = vmul.f32 0.2, %v248_v22  ;;  %vm257_vm2 = vcmp.ge.f32.partialorder %v249_v23, 0.0  ;;  %v265_v31 = vmul.f32 0.2, %v249_v23 }
  0x19   : > { %vm258_vm3 = vcmp.ge.f32.partialorder %v250_v24, 0.0  ;;  %v266_v32 = vmul.f32 0.2, %v250_v24  ;;  %vm259_vm4 = vcmp.ge.f32.partialorder %v251_v25, 0.0  ;;  %v267_v33 = vmul.f32 0.2, %v251_v25 }
  0x1a   : > { %v272_v34 = vsel %vm256_vm1, %v248_v22, %v264_v30  ;;  %v273_v35 = vsel %vm257_vm2, %v249_v23, %v265_v31  ;;  %vm260_vm5 = vcmp.ge.f32.partialorder %v252_v26, 0.0  ;;  %v268_v36 = vmul.f32 0.2, %v252_v26 }
  0x1b   : > { %281 = vst.msk [vmem:[%s512_s27] sm:$0xff] %vm280_vm0, %v272_v34  ;;  %282 = vst.msk [vmem:[%s512_s27 + $0x8] sm:$0xff] %vm280_vm0, %v273_v35  ;;  %v274_v37 = vsel %vm258_vm3, %v250_v24, %v266_v32  ;;  %v275_v38 = vsel %vm259_vm4, %v251_v25, %v267_v33  ;;  %vm261_vm6 = vcmp.ge.f32.partialorder %v253_v27, 0.0  ;;  %v269_v39 = vmul.f32 0.2, %v253_v27 }
  0x1c   : > { %283 = vst.msk [vmem:[%s512_s27 + $0x10] sm:$0xff] %vm280_vm0, %v274_v37  ;;  %284 = vst.msk [vmem:[%s512_s27 + $0x18] sm:$0xff] %vm280_vm0, %v275_v38  ;;  %v276_v40 = vsel %vm260_vm5, %v252_v26, %v268_v36  ;;  %vm262_vm7 = vcmp.ge.f32.partialorder %v254_v28, 0.0  ;;  %v270_v41 = vmul.f32 0.2, %v254_v28  ;;  %vm263_vm8 = vcmp.ge.f32.partialorder %v255_v29, 0.0 }
  0x1d   : > { %285 = vst.msk [vmem:[%s512_s27 + $0x20] sm:$0xff] %vm280_vm0, %v276_v40  ;;  %v277_v42 = vsel %vm261_vm6, %v253_v27, %v269_v39  ;;  %v271_v43 = vmul.f32 0.2, %v255_v29 }
  0x1e   : > { %286 = vst.msk [vmem:[%s512_s27 + $0x28] sm:$0xff] %vm280_vm0, %v277_v42  ;;  %v278_v44 = vsel %vm262_vm7, %v254_v28, %v270_v41 }
  0x1f   : > { %287 = vst.msk [vmem:[%s512_s27 + $0x30] sm:$0xff] %vm280_vm0, %v278_v44  ;;  %v279_v45 = vsel %vm263_vm8, %v255_v29, %v271_v43 }
  0x20   : > { %288 = vst.msk [vmem:[%s512_s27 + $0x38] sm:$0xff] %vm280_vm0, %v279_v45 }
  0x21 PF: > { %s13_s14 = sadd.s32 1, %s456_s14   ;;  %s543_s12 = smov %s452_s13 }
  0x22   : > { %p10_p5 = scmp.ge.s32.totalorder %s13_s14, 4   ;;  %s544_s13 = smov %s546_s15 }
  0x24   :  { %12 = sbr.rel (!%p10_p5) target bundleno = 2 (0x2), region = 62 }

// kernel: down_conv_block.2
= control target key start
LH: loop header
LB: loop body
LE: loop exit
PB: predicated region body
PF: predicated region fallthrough
CT: control target
= control target key end

     0   :  { %s2946_s27 = smov 0   ;;  %s2948_s28 = smov 0   ;;  %s3390_s0 = inlined_call_operand.vmem [shape: bf16[2,9,9,4], index: 0, kind: input, shape index: {}, may-alias: {0,1}]   ;;  %s3391_s1 = inlined_call_operand.vmem [shape: bf16[2,9,9,4], index: 1, kind: input, shape index: {}, may-alias: {0,1}]   ;;  %s3392_s2 = inlined_call_operand.vmem [shape: bf16[2,9,9,4], index: 2, kind: input, shape index: {}, may-alias: {2,3}]   ;;  %s3393_s3 = inlined_call_operand.vmem [shape: bf16[2,9,9,4], index: 3, kind: input, shape index: {}, may-alias: {2,3}]   ;;  %s3394_s4 = inlined_call_operand.vmem [shape: bf16[2,9,9,4], index: 4, kind: input, shape index: {}]   ;;  %s3395_s5 = inlined_call_operand.vmem [shape: bf16[2,9,9,4], index: 5, kind: input, shape index: {}]   ;;  %s3396_s6 = inlined_call_operand.vmem [shape: bf16[3,3,4,128], index: 6, kind: input, shape index: {}]   ;;  %s3397_s7 = inlined_call_operand.vmem [shape: bf16[2,8,8,8], index: 7, kind: output, shape index: {0}]   ;;  %s3398_s8 = inlined_call_operand.vmem [shape: f32[2,1,2,8], index: 8, kind: output, shape index: {1}]  }
   0x1   :  { %s2950_s29 = smov 0  }
   0x2 LB: > { %s31_s30 = sadd.s32 1, %s2893_s28  ;;  %p2479_p0 = scmp.ge.s32.totalorder %s2897_s29, 1  ;;  %s2897_s29 = sphi %s2950_s29, %s19_s29   ;;  %s2893_s28 = sphi %s2948_s28, %s3403_s28   ;;  %s2889_s27 = sphi %s2946_s27, %s3402_s27  }
   0x3   : > { %p33_p1 = scmp.ge.s32.totalorder %s31_s30, 2  ;;  %p431_p2 = scmp.lt.s32.totalorder %s2897_s29, 3 }
   0x5   : > { %s3405_s30 = smov (%p33_p1, %s31_s30), 0  ;;  %p432_p3 = pnand %p2479_p0, %p431_p2 }
   0x6   : > { %v729_v0 = vld [vmem:[%s3396_s6] sm:$0x3] (!%p432_p3)  ;;  %vm763_vm0 = vcmask (!%p432_p3), 1041408   ;;  %v2524_v1 = vld [vmem:[%s3396_s6 + $0x8] sm:$0x3] (!%p432_p3)  ;;  %p559_p4 = scmp.lt.s32.totalorder (!%p432_p3), %s2889_s27, 1 }
   0x7   : > { %435 = sbr.rel (%p432_p3) target bundleno = 344 (0x158), region = 48  ;;  %2812 = vmatprep.subr.msk.bf16.mxu1 (!%p432_p3), %vm763_vm0, %v729_v0  ;;  %v765_v2 = vsel (!%p432_p3), %vm763_vm0, %v729_v0, 0  ;;  %2816 = vmatprep.subr.msk.bf16.mxu0 (!%p432_p3), %vm763_vm0, %v2524_v1  ;;  %v1360_v3 = vsel (!%p432_p3), %vm763_vm0, %v2524_v1, 0  ;;  %v2497_v4 = vld [vmem:[%s3396_s6 + $0x2] sm:$0x3] (!%p432_p3)  ;;  %vm750_vm1 = vcmask (!%p432_p3), 31744  }
   0x8   : > { %2648 = vmatpush3.bf16.msra.mxu1 (!%p432_p3), %v765_v2  ;;  %2688 = vmatpush3.bf16.msra.mxu0 (!%p432_p3), %v1360_v3  ;;  %v2533_v5 = vld [vmem:[%s3396_s6 + $0xa] sm:$0x3] (!%p432_p3)  ;;  %v2506_v6 = vld [vmem:[%s3396_s6 + $0x4] sm:$0x3] (!%p432_p3)  ;;  %v2542_v7 = vld [vmem:[%s3396_s6 + $0xc] sm:$0x3] (!%p432_p3) }
   0x9   : > { %2813 = vmatprep.subr.msk.bf16.mxu1 (!%p432_p3), %vm763_vm0, %v2497_v4  ;;  %2817 = vmatprep.subr.msk.bf16.mxu0 (!%p432_p3), %vm763_vm0, %v2533_v5  ;;  %v875_v8 = vsel (!%p432_p3), %vm763_vm0, %v2497_v4, 0  ;;  %v1590_v9 = vsel (!%p432_p3), %vm763_vm0, %v2533_v5, 0  ;;  %v3008_v10 = vsel (!%p432_p3), %vm763_vm0, %v2506_v6, 0  ;;  %v3011_v11 = vsel (!%p432_p3), %vm763_vm0, %v2542_v7, 0  ;;  %v3016_v12 = vld [vmem:[%s3396_s6 + $0x6] sm:$0x3] (!%p432_p3) }
   0xa   : > { %v3031_v22 = vsel (!%p432_p3), %vm763_vm0, %v3016_v12, 0  ;;  %vm966_vm2 = vsmask.f32 (!%p432_p3), 3328  ;;  %vm967_vm3 = vsmask.f32 (!%p432_p3), 7440  ;;  %vm2900_vm5 = vmmov (!%p432_p3), 0  }
   0xb   : > { %vm3143_vm4 = vmor (!%p432_p3), %vm966_vm2, %vm967_vm3  ;;  %vm2230_vm6 = vcmask (!%p432_p3), 60416   ;;  %vm2195_vm7 = vcmask (!%p432_p3), 57344  }
   0xe   : > { %s3407_s27 = smov (!%p559_p4, %s2889_s27), 1 }
   0xf   : > { %s2988_s19 = smul.u32 72, %s3407_s27  ;;  %s2488_s15 = sshll.u32 %s3407_s27, 1 }
  0x10   : > { %s679_s18 = scalar_lea.vmem %s3398_s8, %s2488_s15 }
  0x11   : > { %s2997_s24 = scalar_lea.vmem %s3390_s0, %s2988_s19  ;;  %s3003_s9 = scalar_lea.vmem %s3395_s5, %s2988_s19 }
  0x12   : > { %v681_v13 = vld [vmem:[%s2997_s24] sm:$0xf]  ;;  %v3020_v14 = vld [vmem:[%s2997_s24 + $0x8] sm:$0xf]  ;;  %v3027_v21 = vld [vmem:[%s2997_s24 + $0x10] sm:$0xf]  ;;  %s3073_s14 = scalar_lea.vmem %s3392_s2, %s2988_s19  ;;  %s3089_s17 = scalar_lea.vmem %s3394_s4, %s2988_s19 }
  0x13   : > { %v2489_v15 = vcombine.low %v681_v13, %v3020_v14  ;;  %v970_v16 = vshrl.u32 %v681_v13, 16  ;;  %v973_v17 = vshll.u32 %v681_v13, 16  ;;  %v984_v18 = vshrl.u32 %v3020_v14, 16  ;;  %v2851_v20 = vld [vmem:[%s3003_s9] ss:$8 sps:$4 sm:$0xff]   ;;  %s2584_s21 = sadd.s32 64, %s2988_s19 }
  0x14   : > { %v987_v19 = vshll.u32 %v3020_v14, 16  ;;  %v3035_v26 = vld [vmem:[%s2997_s24 + $0x18] sm:$0xf]  ;;  %v998_v27 = vshrl.u32 %v3027_v21, 16  ;;  %2689 = vmatprep.mubr.msk.bf16.mxu0 %vm750_vm1, %v2851_v20  ;;  %v1001_v30 = vshll.u32 %v3027_v21, 16  ;;  %s3230_s25 = scalar_lea.vmem %s3391_s1, %s2584_s21  ;;  %s618_s11 = scalar_lea.vmem %s3393_s3, %s2584_s21 }
  0x15   : > { %2649 = vmatprep.mubr.msk.bf16.mxu1 %vm750_vm1, %v2489_v15  ;;  %v972_v23 = vrot.slane %v970_v16, 4  ;;  %v975_v24 = vrot.slane %v973_v17, 5  ;;  %v986_v25 = vrot.slane %v984_v18, 4  ;;  %v2490_v29 = vcombine.low %v3027_v21, %v3035_v26  ;;  %v2853_v35 = vld [vmem:[%s3003_s9 + $0x10] ss:$8 sps:$4 sm:$0xff]   ;;  %s2587_s19 = sshll.u32 %s3407_s27, 5 }
  0x16   : > { %v989_v28 = vrot.slane %v987_v19, 5  ;;  %v1012_v31 = vshrl.u32 %v3035_v26, 16  ;;  %v1000_v33 = vrot.slane %v998_v27, 4  ;;  %v1015_v34 = vshll.u32 %v3035_v26, 16  ;;  %v3047_v39 = vld [vmem:[%s2997_s24 + $0x20] sm:$0xf]  ;;  %2690 = vmatmul.mubr.msk.bf16.vlgmr.msra.gmra.mrb[0].mxu0 %vm750_vm1, %v2853_v35 }
  0x17   : > { %v976_v32 = vor.u32 %v975_v24, %v972_v23  ;;  %2650 = vmatmul.mubr.msk.bf16.vlgmr.msra.gmra.mrb[0].mxu1 %vm750_vm1, %v2490_v29  ;;  %v1003_v37 = vrot.slane %v1001_v30, 5  ;;  %v3050_v40 = vld [vmem:[%s2997_s24 + $0x28] sm:$0xf]  ;;  %v1026_v44 = vshrl.u32 %v3047_v39, 16  ;;  %2698 = vmatpush3.bf16.msra.mxu0 %v1590_v9  ;;  %v1029_v47 = vshll.u32 %v3047_v39, 16 }
  0x18   : > { %v990_v36 = vor.u32 %v989_v28, %v986_v25  ;;  %v1014_v38 = vrot.slane %v1012_v31, 4  ;;  %v1017_v42 = vrot.slane %v1015_v34, 5  ;;  %2658 = vmatpush3.bf16.msra.mxu1 %v875_v8  ;;  %v2491_v43 = vcombine.low %v3047_v39, %v3050_v40  ;;  %v2856_v51 = vld [vmem:[%s3003_s9 + $0x20] ss:$8 sps:$4 sm:$0xff]   ;;  %v3067_v52 = vld [vmem:[%s2997_s24 + $0x30] sm:$0xf]  ;;  %2818 = vmatprep.subr.msk.bf16.mxu0 %vm763_vm0, %v2542_v7 }
  0x19   : > { %v3052_v41 = vrot.slane %v976_v32, 4  ;;  %v1004_v46 = vor.u32 %v1003_v37, %v1000_v33  ;;  %v1040_v48 = vshrl.u32 %v3050_v40, 16  ;;  %2814 = vmatprep.subr.msk.bf16.mxu1 %vm763_vm0, %v2506_v6  ;;  %v1043_v50 = vshll.u32 %v3050_v40, 16  ;;  %v3081_v55 = vld [vmem:[%s2997_s24 + $0x38] sm:$0xf]  ;;  %2693 = vmatprep.mubr.msk.bf16.mxu0 %vm750_vm1, %v2856_v51 }
  0x1a   : > { %v3058_v45 = vrot.slane %v990_v36, 4  ;;  %v1018_v49 = vor.u32 %v1017_v42, %v1014_v38  ;;  %2653 = vmatprep.mubr.msk.bf16.mxu1 %vm750_vm1, %v2491_v43  ;;  %v3076_v53 = vrot.slane %v1026_v44, 4  ;;  %v1054_v56 = vshrl.u32 %v3067_v52, 16  ;;  %v2858_v63 = vld [vmem:[%s3003_s9 + $0x30] ss:$8 sps:$4 sm:$0xff]  }
  0x1b   : > { %v3078_v54 = vrot.slane %v1004_v46, 4  ;;  %v1057_v57 = vshll.u32 %v3067_v52, 16  ;;  %v3091_v58 = vrot.slane %v1029_v47, 5  ;;  %v2492_v60 = vcombine.low %v3067_v52, %v3081_v55  ;;  %v697_v0 = vld [vmem:[%s3073_s14] sm:$0xf] }
  0x1c   : > { %v3093_v59 = vrot.slane %v1018_v49, 4  ;;  %v1068_v61 = vshrl.u32 %v3081_v55, 16  ;;  %v3103_v1 = vld [vmem:[%s3073_s14 + $0x8] sm:$0xf]  ;;  %v3106_v2 = vld [vmem:[%s3089_s17] sm:$0xf]  ;;  %v2543_v24 = vcombine.low %v3020_v14, %v3027_v21  ;;  %v2544_v14 = vcombine.low %v3035_v26, %v3047_v39 }
  0x1d   : > { %v706_v3 = vld [vmem:[%s3089_s17 + $0x4] sm:$0x1]  ;;  %v2498_v4 = vcombine.low %v697_v0, %v3103_v1  ;;  %v3112_v5 = vld [vmem:[%s3089_s17 + $0x8] sm:$0xf]  ;;  %v708_v6 = vld [vmem:[%s3089_s17 + $0xc] sm:$0x1] }
  0x1e   : > { %v1452_v7 = vshrl.u32 %v3106_v2, 16  ;;  %v1455_v8 = vshll.u32 %v3106_v2, 16  ;;  %2694 = vmatmul.mubr.msk.bf16.gmra.mrb[4].mxu0 %vm750_vm1, %v2858_v63  ;;  %v1461_v9 = vshll.u32 %v706_v3, 16  ;;  %v1466_v13 = vshrl.u32 %v3112_v5, 16  ;;  %v3121_v17 = vld [vmem:[%s3073_s14 + $0x10] sm:$0xf] }
  0x1f   : > { %2654 = vmatmul.mubr.msk.bf16.gmra.mrb[4].mxu1 %vm750_vm1, %v2492_v60  ;;  %v1469_v15 = vshll.u32 %v3112_v5, 16  ;;  %v1475_v16 = vshll.u32 %v708_v6, 16  ;;  %v3125_v20 = vld [vmem:[%s3073_s14 + $0x18] sm:$0xf]  ;;  %v3128_v23 = vld [vmem:[%s3089_s17 + $0x10] sm:$0xf]  ;;  %v2516_v26 = vcombine.low %v3106_v2, %v3112_v5  ;;  %v2553_v2 = vcombine.low %v3103_v1, %v3121_v17 }
  0x20   : > { %2659 = vmatprep.mubr.msk.bf16.mxu1 %vm750_vm1, %v2498_v4  ;;  %v1454_v18 = vrot.slane %v1452_v7, 4  ;;  %v1457_v19 = vrot.slane %v1455_v8, 5  ;;  %v1463_v25 = vrot.slane %v1461_v9, 5  ;;  %v1468_v27 = vrot.slane %v1466_v13, 4  ;;  %v710_v30 = vld [vmem:[%s3089_s17 + $0x14] sm:$0x1] }
  0x21   : > { %v1471_v28 = vrot.slane %v1469_v15, 5  ;;  %v1477_v29 = vrot.slane %v1475_v16, 5  ;;  %v2499_v32 = vcombine.low %v3121_v17, %v3125_v20  ;;  %v3136_v33 = vld [vmem:[%s3089_s17 + $0x18] sm:$0xf]  ;;  %v712_v34 = vld [vmem:[%s3089_s17 + $0x1c] sm:$0x1]  ;;  %v1032_v7 = vor.u32 %v3091_v58, %v3076_v53 }
  0x22   : > { %v1458_v31 = vor.u32 %v1457_v19, %v1454_v18  ;;  %v1480_v35 = vshrl.u32 %v3128_v23, 16  ;;  %v1483_v36 = vshll.u32 %v3128_v23, 16  ;;  %v1489_v42 = vshll.u32 %v710_v30, 16  ;;  %v3150_v46 = vld [vmem:[%s3073_s14 + $0x20] sm:$0xf] }
  0x23   : > { %v1472_v38 = vor.u32 %v1471_v28, %v1468_v27  ;;  %v1494_v43 = vshrl.u32 %v3136_v33, 16  ;;  %v1497_v44 = vshll.u32 %v3136_v33, 16  ;;  %v1503_v60 = vshll.u32 %v712_v34, 16  ;;  %v3153_v63 = vld [vmem:[%s3073_s14 + $0x28] sm:$0xf] }
  0x24   : > { %v1459_v47 = vrot.slane %v1458_v31, 4  ;;  %v1482_v49 = vrot.slane %v1480_v35, 4  ;;  %v1485_v51 = vrot.slane %v1483_v36, 5  ;;  %v3156_v6 = vld [vmem:[%s3089_s17 + $0x20] sm:$0xf]  ;;  %v1491_v13 = vrot.slane %v1489_v42, 5 }
  0x25   : > { %v1473_v0 = vrot.slane %v1472_v38, 4  ;;  %v1496_v3 = vrot.slane %v1494_v43, 4  ;;  %v1499_v4 = vrot.slane %v1497_v44, 5  ;;  %v2500_v15 = vcombine.low %v3150_v46, %v3153_v63  ;;  %v714_v16 = vld [vmem:[%s3089_s17 + $0x24] sm:$0x1] }
  0x26   : > { %v1464_v8 = vsel %vm3143_vm4, %v1459_v47, %v1463_v25  ;;  %v1486_v9 = vor.u32 %v1485_v51, %v1482_v49  ;;  %v3167_v18 = vld [vmem:[%s3089_s17 + $0x28] sm:$0xf]  ;;  %v1505_v28 = vrot.slane %v1503_v60, 5  ;;  %v716_v25 = vld [vmem:[%s3089_s17 + $0x2c] sm:$0x1]  ;;  %v1508_v30 = vshrl.u32 %v3156_v6, 16 }
  0x27   : > { %2660 = vmatmul.mubr.msk.bf16.vlgmr.msra.gmra.mrb[0].mxu1 %vm750_vm1, %v2499_v32  ;;  %v1478_v19 = vsel %vm3143_vm4, %v1473_v0, %v1477_v29  ;;  %v1500_v27 = vor.u32 %v1499_v4, %v1496_v3  ;;  %v3175_v31 = vld [vmem:[%s3073_s14 + $0x30] sm:$0xf]  ;;  %v1511_v35 = vshll.u32 %v3156_v6, 16  ;;  %v1517_v36 = vshll.u32 %v714_v16, 16  ;;  %v3180_v38 = vld [vmem:[%s3073_s14 + $0x38] sm:$0xf]  ;;  %s3359_s14 = scalar_lea.vmem %s3397_s7, %s2587_s19 }
  0x28   : > { %2668 = vmatpush3.bf16.msra.mxu1 %v3008_v10  ;;  %v2534_v32 = vcombine.low %v1464_v8, %v1478_v19  ;;  %v1487_v34 = vrot.slane %v1486_v9, 4  ;;  %2663 = vmatprep.mubr.msk.bf16.mxu1 %vm750_vm1, %v2500_v15  ;;  %v1510_v29 = vrot.slane %v1508_v30, 4  ;;  %v1522_v42 = vshrl.u32 %v3167_v18, 16  ;;  %v3187_v44 = vld [vmem:[%s3089_s17 + $0x30] sm:$0xf] }
  0x29   : > { %2815 = vmatprep.subr.msk.bf16.mxu1 %vm763_vm0, %v3016_v12  ;;  %v1501_v10 = vrot.slane %v1500_v27, 4  ;;  %v1525_v43 = vshll.u32 %v3167_v18, 16  ;;  %v1513_v49 = vrot.slane %v1511_v35, 5  ;;  %v1519_v51 = vrot.slane %v1517_v36, 5  ;;  %v718_v12 = vld [vmem:[%s3089_s17 + $0x34] sm:$0x1] }
  0x2a   : > { %2699 = vmatprep.mubr.msk.bf16.mxu0 %vm750_vm1, %v2534_v32  ;;  %v1492_v47 = vsel %vm3143_vm4, %v1487_v34, %v1491_v13  ;;  %v1531_v60 = vshll.u32 %v716_v25, 16  ;;  %v1524_v3 = vrot.slane %v1522_v42, 4  ;;  %v2501_v8 = vcombine.low %v3175_v31, %v3180_v38  ;;  %v3198_v9 = vld [vmem:[%s3089_s17 + $0x38] sm:$0xf]  ;;  %v720_v15 = vld [vmem:[%s3089_s17 + $0x3c] sm:$0x1] }
  0x2b   : > { %v1506_v0 = vsel %vm3143_vm4, %v1501_v10, %v1505_v28  ;;  %v1527_v4 = vrot.slane %v1525_v43, 5  ;;  %v1514_v19 = vor.u32 %v1513_v49, %v1510_v29  ;;  %v1536_v27 = vshrl.u32 %v3187_v44, 16  ;;  %v682_v25 = vld [vmem:[%s2997_s24 + $0x4] sm:$0x1]  ;;  %v3206_v28 = vld [vmem:[%s3396_s6 + $0xe] sm:$0x3] }
  0x2c   : > { %v2535_v16 = vcombine.low %v1492_v47, %v1506_v0  ;;  %v1533_v13 = vrot.slane %v1531_v60, 5  ;;  %v1539_v32 = vshll.u32 %v3187_v44, 16  ;;  %v1545_v34 = vshll.u32 %v718_v12, 16  ;;  %v684_v36 = vld [vmem:[%s2997_s24 + $0xc] sm:$0x1] }
  0x2d   : > { %v1528_v30 = vor.u32 %v1527_v4, %v1524_v3  ;;  %v1550_v35 = vshrl.u32 %v3198_v9, 16  ;;  %v1515_v10 = vrot.slane %v1514_v19, 4  ;;  %v1538_v29 = vrot.slane %v1536_v27, 4  ;;  %v686_v47 = vld [vmem:[%s2997_s24 + $0x14] sm:$0x1] }
  0x2e   : > { %2700 = vmatmul.mubr.msk.bf16.vlgmr.msra.gmra.mrb[0].mxu0 %vm750_vm1, %v2535_v16  ;;  %v1553_v42 = vshll.u32 %v3198_v9, 16  ;;  %v1559_v43 = vshll.u32 %v720_v15, 16  ;;  %v1541_v60 = vrot.slane %v1539_v32, 5  ;;  %v1547_v12 = vrot.slane %v1545_v34, 5  ;;  %v688_v3 = vld [vmem:[%s2997_s24 + $0x1c] sm:$0x1] }
  0x2f   : > { %2664 = vmatmul.mubr.msk.bf16.gmra.mrb[4].mxu1 %vm750_vm1, %v2501_v8  ;;  %2708 = vmatpush3.bf16.msra.mxu0 %v3011_v11  ;;  %v1529_v49 = vrot.slane %v1528_v30, 4  ;;  %v1552_v0 = vrot.slane %v1550_v35, 4  ;;  %v1520_v4 = vsel %vm3143_vm4, %v1515_v10, %v1519_v51  ;;  %v979_v8 = vshll.u32 %v682_v25, 16  ;;  %v690_v32 = vld [vmem:[%s2997_s24 + $0x24] sm:$0x1] }
  0x30   : > { %v1555_v16 = vrot.slane %v1553_v42, 5  ;;  %v1561_v19 = vrot.slane %v1559_v43, 5  ;;  %2819 = vmatprep.subr.msk.bf16.mxu0 %vm763_vm0, %v3206_v28  ;;  %v1542_v27 = vor.u32 %v1541_v60, %v1538_v29  ;;  %v993_v62 = vshll.u32 %v684_v36, 16  ;;  %v694_v58 = vld [vmem:[%s2997_s24 + $0x34] sm:$0x1] }
  0x31   : > { %v1534_v15 = vsel %vm3143_vm4, %v1529_v49, %v1533_v13  ;;  %v1007_v30 = vshll.u32 %v686_v47, 16  ;;  %v981_v25 = vrot.slane %v979_v8, 5  ;;  %v1021_v35 = vshll.u32 %v688_v3, 16  ;;  %v692_v49 = vld [vmem:[%s2997_s24 + $0x2c] sm:$0x1] }
  0x32   : > { %v2536_v51 = vcombine.low %v1520_v4, %v1534_v15  ;;  %v1556_v34 = vor.u32 %v1555_v16, %v1552_v0  ;;  %v1543_v10 = vrot.slane %v1542_v27, 4  ;;  %v995_v42 = vrot.slane %v993_v62, 5  ;;  %v696_v8 = vld [vmem:[%s2997_s24 + $0x3c] sm:$0x1]  ;;  %v2562_v39 = vld [vmem:[%s3396_s6 + $0x10] sm:$0x3] }
  0x33   : > { %v1009_v43 = vrot.slane %v1007_v30, 5  ;;  %v1033_v13 = vrot.slane %v1032_v7, 4  ;;  %v982_v29 = vsel %vm3143_vm4, %v3052_v41, %v981_v25  ;;  %v1023_v47 = vrot.slane %v1021_v35, 5 }
  0x34   : > { %2703 = vmatprep.mubr.msk.bf16.mxu0 %vm750_vm1, %v2536_v51  ;;  %v1557_v36 = vrot.slane %v1556_v34, 4  ;;  %v1035_v60 = vshll.u32 %v690_v32, 16  ;;  %v1548_v0 = vsel %vm3143_vm4, %v1543_v10, %v1547_v12  ;;  %v3245_v62 = vsel %vm3143_vm4, %v3058_v45, %v995_v42 }
  0x35   : > { %v3250_v53 = vsel %vm3143_vm4, %v3078_v54, %v1009_v43  ;;  %v1042_v41 = vrot.slane %v1040_v48, 4  ;;  %v2507_v3 = vcombine.low %v982_v29, %v3245_v62  ;;  %v3261_v12 = vsel %vm3143_vm4, %v3093_v59, %v1023_v47 }
  0x36   : > { %v1562_v7 = vsel %vm3143_vm4, %v1557_v36, %v1561_v19  ;;  %v1037_v45 = vrot.slane %v1035_v60, 5  ;;  %v2508_v54 = vcombine.low %v3250_v53, %v3261_v12  ;;  %v1045_v16 = vrot.slane %v1043_v50, 5 }
  0x37   : > { %v2537_v4 = vcombine.low %v1548_v0, %v1562_v7  ;;  %v1049_v48 = vshll.u32 %v692_v49, 16  ;;  %2669 = vmatprep.mubr.msk.bf16.mxu1 %vm750_vm1, %v2507_v3  ;;  %v1056_v19 = vrot.slane %v1054_v56, 4  ;;  %v1059_v15 = vrot.slane %v1057_v57, 5 }
  0x38   : > { %v1063_v59 = vshll.u32 %v694_v58, 16  ;;  %2670 = vmatmul.mubr.msk.bf16.vlgmr.msra.gmra.mrb[0].mxu1 %vm750_vm1, %v2508_v54  ;;  %v1046_v27 = vor.u32 %v1045_v16, %v1042_v41  ;;  %v1070_v50 = vrot.slane %v1068_v61, 4  ;;  %v3401_v57 = vshll.u32 %v3081_v55, 16 }
  0x39   : > { %2704 = vmatmul.mubr.msk.bf16.gmra.mrb[4].mxu0 %vm750_vm1, %v2537_v4  ;;  %v1051_v30 = vrot.slane %v1049_v48, 5  ;;  %2678 = vmatpush3.bf16.msra.mxu1 %v3031_v22  ;;  %v1060_v56 = vor.u32 %v1059_v15, %v1056_v19  ;;  %v1077_v34 = vshll.u32 %v696_v8, 16  ;;  %v1038_v25 = vsel %vm3143_vm4, %v1033_v13, %v1037_v45 }
  0x3a   : > { %2709 = vmatprep.mubr.msk.bf16.mxu0 %vm750_vm1, %v2543_v24  ;;  %v1065_v32 = vrot.slane %v1063_v59, 5  ;;  %v1073_v51 = vrot.slane %v3401_v57, 5  ;;  %v1047_v35 = vrot.slane %v1046_v27, 4  ;;  %v2899_v10 = vmov 0.0  }
  0x3b   : > { %2717 = vmatprep.subr.bf16.mxu1 %v2899_v10  ;;  %v1061_v61 = vrot.slane %v1060_v56, 4  ;;  %v1079_v43 = vrot.slane %v1077_v34, 5  ;;  %v2545_v24 = vcombine.low %v3050_v40, %v3067_v52  ;;  %v1860_v29 = vsel %vm763_vm0, %v3206_v28, 0 }
  0x3c   : > { %v1074_v42 = vor.u32 %v1073_v51, %v1070_v50  ;;  %v1052_v21 = vsel %vm3143_vm4, %v1047_v35, %v1051_v30  ;;  %v2546_v52 = vcombine.low %v3081_v55, %v3081_v55  ;;  %v2517_v5 = vcombine.low %v3128_v23, %v3136_v33  ;;  %v1788_v33 = vld [vmem:[%s3230_s25] sm:$0xf] }
  0x3d   : > { %v2509_v22 = vcombine.low %v1038_v25, %v1052_v21  ;;  %v1066_v36 = vsel %vm3143_vm4, %v1061_v61, %v1065_v32  ;;  %v2518_v37 = vcombine.low %v3156_v6, %v3167_v18  ;;  %v2554_v55 = vcombine.low %v3125_v20, %v3150_v46  ;;  %v2874_v6 = vld [vmem:[%s3230_s25] sm:$0x1f]  }
  0x3e   : > { %v1075_v13 = vrot.slane %v1074_v42, 4  ;;  %v2555_v1 = vcombine.low %v3153_v63, %v3175_v31  ;;  %v2013_v17 = vsel %vm763_vm0, %v2562_v39, 0  ;;  %v2519_v23 = vcombine.low %v3187_v44, %v3198_v9  ;;  %v1941_v18 = vld [vmem:[%s618_s11] sm:$0xf] }
  0x3f   : > { %2673 = vmatprep.mubr.msk.bf16.mxu1 %vm750_vm1, %v2509_v22  ;;  %v2563_v20 = vcombine.low %v3245_v62, %v3250_v53  ;;  %v2564_v46 = vcombine.low %v3261_v12, %v1038_v25  ;;  %v2565_v63 = vcombine.low %v1052_v21, %v1066_v36  ;;  %v2104_v31 = vshll.u32 %v2874_v6, 16 }
  0x40   : > { %v1080_v47 = vsel %vm3143_vm4, %v1075_v13, %v1079_v43  ;;  %v2102_v44 = vshrl.u32 %v2874_v6, 16 }
  0x41   : > { %2710 = vmatmul.mubr.msk.bf16.vlgmr.msra.gmra.mrb[0].mxu0 %vm750_vm1, %v2544_v14  ;;  %v2510_v40 = vcombine.low %v1066_v36, %v1080_v47  ;;  %v2106_v9 = vrot.slane %v2104_v31, 1 }
  0x42   : > { %2724 = vmatpush3.bf16.msra.mxu0 %v1860_v29  ;;  %2713 = vmatprep.mubr.msk.bf16.mxu0 %vm750_vm1, %v2545_v24 }
  0x43   : > { %2674 = vmatmul.mubr.msk.bf16.gmra.mrb[4].mxu1 %vm750_vm1, %v2510_v40  ;;  %2820 = vmatprep.subr.msk.bf16.mxu0 %vm763_vm0, %v2562_v39  ;;  %v2107_v28 = vor.u32 %v2106_v9, %v2102_v44 }
  0x44   : > { %2679 = vmatprep.mubr.msk.bf16.mxu1 %vm750_vm1, %v2516_v26 }
  0x49   : > { %2714 = vmatmul.mubr.msk.bf16.gmra.mrb[8].mxu0 %vm750_vm1, %v2546_v52 }
  0x4a   : > { %2725 = vmatprep.mubr.msk.bf16.mxu0 %vm750_vm1, %v2553_v2 }
  0x4b   : > { %2680 = vmatmul.mubr.msk.bf16.vlgmr.msra.gmra.mrb[0].mxu1 %vm750_vm1, %v2517_v5 }
  0x4c   : > { %2718 = vmatpush3.bf16.msra.mxu1 %v3011_v11  ;;  %2683 = vmatprep.mubr.msk.bf16.mxu1 %vm750_vm1, %v2518_v37  ;;  %v2556_v11 = vcombine.low %v3180_v38, %v3180_v38  ;;  %v2566_v38 = vcombine.low %v1080_v47, %v1080_v47 }
  0x4d   : > { %2733 = vmatprep.subr.bf16.mxu1 %v2899_v10 }
  0x51   : > { %2726 = vmatmul.mubr.msk.bf16.vlgmr.msra.gmra.mrb[0].mxu0 %vm750_vm1, %v2554_v55 }
  0x52   : > { %2740 = vmatpush3.bf16.msra.mxu0 %v2013_v17  ;;  %2729 = vmatprep.mubr.msk.bf16.mxu0 %vm750_vm1, %v2555_v1 }
  0x53   : > { %2684 = vmatmul.mubr.msk.bf16.gmra.mrb[4].mxu1 %vm750_vm1, %v2519_v23 }
  0x54   : > { %2719 = vmatprep.mubr.msk.bf16.mxu1 %vm2900_vm5, %v2899_v10 }
  0x59   : > { %2730 = vmatmul.mubr.msk.bf16.gmra.mrb[12].mxu0 %vm750_vm1, %v2556_v11 }
  0x5a   : > { %2741 = vmatprep.mubr.msk.bf16.mxu0 %vm750_vm1, %v2563_v20 }
  0x5b   : > { %2720 = vmatmul.mubr.msk.bf16.vlgmr.msra.gmra.mrb[8].mxu1 %vm750_vm1, %v1788_v33 }
  0x5c   : > { %2734 = vmatpush3.bf16.msra.mxu1 %v1860_v29  ;;  %2735 = vmatprep.mubr.msk.bf16.mxu1 %vm2900_vm5, %v2899_v10 }
  0x5d   : > { %2749 = vmatprep.subr.bf16.mxu1 %v2899_v10 }
  0x61   : > { %2742 = vmatmul.mubr.msk.bf16.vlgmr.msra.gmra.mrb[0].mxu0 %vm750_vm1, %v2564_v46 }
  0x62   : > { %2745 = vmatprep.mubr.msk.bf16.mxu0 %vm750_vm1, %v2565_v63 }
  0x63   : > { %2736 = vmatmul.mubr.msk.bf16.vlgmr.msra.gmra.mrb[12].mxu1 %vm750_vm1, %v1941_v18 }
  0x64   : > { %2750 = vmatpush3.bf16.msra.mxu1 %v2013_v17  ;;  %2751 = vmatprep.mubr.msk.bf16.mxu1 %vm2900_vm5, %v2899_v10 }
  0x69   : > { %2746 = vmatmul.mubr.msk.bf16.gmra.mrb[16].mxu0 %vm750_vm1, %v2566_v38 }
  0x6f   : > { %2752 = vmatmul.mubr.msk.bf16.vlgmr.msra.gmra.mrb[12].mxu1 %vm750_vm1, %v2107_v28 }
 0x10c   : > { %v2705_v49 = vpop.f32.mrb[4].mxu0 }
 0x10d   : > { %v1642_v60 = vpop.f32.mrb[5].mxu0 }
 0x10e   : > { %v2706_v0 = vpop.f32.mrb[6].mxu0 }
 0x10f   : > { %v1645_v62 = vpop.f32.mrb[7].mxu0 }
 0x11c   : > { %v2715_v53 = vpop.f32.mrb[8].mxu0 }
 0x11d   : > { %v1759_v41 = vpop.f32.mrb[9].mxu0 }
 0x11e   : > { %v2716_v58 = vpop.f32.mrb[10].mxu0  ;;  %v2681_v7 = vpop.f32.mrb[0].mxu1 }
 0x11f   : > { %v1762_v3 = vpop.f32.mrb[11].mxu0  ;;  %v1270_v12 = vpop.f32.mrb[1].mxu1 }
 0x120   : > { %v2682_v45 = vpop.f32.mrb[2].mxu1 }
 0x121   : > { %v1273_v4 = vpop.f32.mrb[3].mxu1 }
 0x126   : > { %v2685_v54 = vpop.f32.mrb[4].mxu1 }
 0x127   : > { %v2759_v16 = vadd.f32 %v2705_v49, %v2685_v54  ;;  %v1286_v48 = vpop.f32.mrb[5].mxu1 }
 0x128   : > { %v2760_v8 = vadd.f32 %v1642_v60, %v1286_v48  ;;  %v2686_v19 = vpop.f32.mrb[6].mxu1 }
 0x129   : > { %v2761_v15 = vadd.f32 %v2706_v0, %v2686_v19  ;;  %v1779_v59 = vadd.f32 %v2759_v16, %v2715_v53  ;;  %v1289_v27 = vpop.f32.mrb[7].mxu1 }
 0x12a   : > { %v2762_v30 = vadd.f32 %v1645_v62, %v1289_v27  ;;  %v1777_v50 = vadd.f32 %v2760_v8, %v1759_v41 }
 0x12c   : > { %v2731_v56 = vpop.f32.mrb[12].mxu0  ;;  %v1778_v32 = vadd.f32 %v2762_v30, %v1762_v3 }
 0x12d   : > { %v1932_v57 = vadd.f32 %v2731_v56, %v1779_v59  ;;  %v1912_v51 = vpop.f32.mrb[13].mxu0 }
 0x12e   : > { %v1930_v34 = vadd.f32 %v1912_v51, %v1777_v50  ;;  %v2732_v25 = vpop.f32.mrb[14].mxu0  ;;  %v1826_v35 = vpop.f32.mrb[8].mxu1 }
 0x12f   : > { %v1915_v10 = vpop.f32.mrb[15].mxu0  ;;  %v1832_v61 = vadd.f32 %v2761_v15, %v1826_v35  ;;  %v2721_v42 = vpop.f32.mrb[9].mxu1 }
 0x130   : > { %v1931_v43 = vadd.f32 %v1915_v10, %v1778_v32  ;;  %v1829_v14 = vpop.f32.mrb[10].mxu1 }
 0x131   : > { %v2722_v21 = vpop.f32.mrb[11].mxu1 }
 0x134   : > { %v2743_v22 = vpop.f32.mrb[0].mxu0 }
 0x135   : > { %v2755_v24 = vadd.f32 %v2743_v22, %v2681_v7  ;;  %v2049_v36 = vpop.f32.mrb[1].mxu0 }
 0x136   : > { %v2756_v13 = vadd.f32 %v2049_v36, %v1270_v12  ;;  %v2744_v29 = vpop.f32.mrb[2].mxu0 }
 0x137   : > { %v2590_v47 = vpack.c.bf16 %v2755_v24, %v2755_v24  ;;  %v2757_v26 = vadd.f32 %v2744_v29, %v2682_v45  ;;  %v2052_v39 = vpop.f32.mrb[3].mxu0  ;;  %v2176_v17 = vmul.f32 %v2755_v24, %v2755_v24 }
 0x138   : > { %v2588_v40 = vpack.c.bf16 %v2756_v13, %v2756_v13  ;;  %v2758_v52 = vadd.f32 %v2052_v39, %v1273_v4  ;;  %v2174_v5 = vmul.f32 %v2756_v13, %v2756_v13 }
 0x139   : > { %2233 = vst.msk [vmem:[%s3359_s14 + $0x8] sm:$0xf] %vm2230_vm6, %v2590_v47  ;;  %v2591_v2 = vpack.c.bf16 %v2757_v26, %v2757_v26  ;;  %v2177_v63 = vmul.f32 %v2757_v26, %v2757_v26 }
 0x13a   : > { %2231 = vst.msk [vmem:[%s3359_s14] sm:$0xf] %vm2230_vm6, %v2588_v40  ;;  %v2161_v37 = vadd.f32 %v2758_v52, %v2756_v13  ;;  %v2175_v55 = vmul.f32 %v2758_v52, %v2758_v52  ;;  %v2589_v1 = vpack.c.bf16 %v2758_v52, %v2758_v52 }
 0x13b   : > { %2234 = vst.msk [vmem:[%s3359_s14 + $0xc] sm:$0xf] %vm2230_vm6, %v2591_v2 }
 0x13c   : > { %v2162_v23 = vadd.f32 %v2755_v24, %v2161_v37  ;;  %v2182_v11 = vadd.f32 %v2175_v55, %v2174_v5  ;;  %2232 = vst.msk [vmem:[%s3359_s14 + $0x4] sm:$0xf] %vm2230_vm6, %v2589_v1  ;;  %v2747_v20 = vpop.f32.mrb[16].mxu0 }
 0x13d   : > { %v2085_v33 = vadd.f32 %v2747_v20, %v1932_v57  ;;  %v2065_v46 = vpop.f32.mrb[17].mxu0 }
 0x13e   : > { %v2183_v6 = vadd.f32 %v2182_v11, %v2176_v17  ;;  %v2083_v18 = vadd.f32 %v2065_v46, %v1930_v34  ;;  %v2163_v31 = vadd.f32 %v2757_v26, %v2162_v23  ;;  %v2748_v38 = vpop.f32.mrb[18].mxu0 }
 0x13f   : > { %v2594_v44 = vpack.c.bf16 %v2085_v33, %v2085_v33  ;;  %v2068_v9 = vpop.f32.mrb[19].mxu0  ;;  %v2180_v4 = vmul.f32 %v2085_v33, %v2085_v33 }
 0x140   : > { %v2164_v28 = vadd.f32 %v2163_v31, %v2083_v18  ;;  %v2178_v49 = vmul.f32 %v2083_v18, %v2083_v18  ;;  %v2184_v60 = vadd.f32 %v2183_v6, %v2177_v63  ;;  %v2592_v0 = vpack.c.bf16 %v2083_v18, %v2083_v18 }
 0x141   : > { %2237 = vst.msk [vmem:[%s3359_s14 + $0x18] sm:$0xf] %vm2230_vm6, %v2594_v44  ;;  %v2084_v62 = vadd.f32 %v2068_v9, %v1931_v43 }
 0x142   : > { %v2185_v53 = vadd.f32 %v2184_v60, %v2178_v49  ;;  %2235 = vst.msk [vmem:[%s3359_s14 + $0x10] sm:$0xf] %vm2230_vm6, %v2592_v0  ;;  %v2145_v41 = vpop.f32.mrb[12].mxu1 }
 0x143   : > { %v2165_v58 = vadd.f32 %v2164_v28, %v2084_v62  ;;  %v2179_v7 = vmul.f32 %v2084_v62, %v2084_v62  ;;  %v2593_v3 = vpack.c.bf16 %v2084_v62, %v2084_v62  ;;  %v2763_v12 = vadd.f32 %v2145_v41, %v1832_v61  ;;  %v2753_v45 = vpop.f32.mrb[13].mxu1 }
 0x144   : > { %v2148_v54 = vpop.f32.mrb[14].mxu1 }
 0x145   : > { %v2186_v16 = vadd.f32 %v2185_v53, %v2179_v7  ;;  %2236 = vst.msk [vmem:[%s3359_s14 + $0x14] sm:$0xf] %vm2230_vm6, %v2593_v3  ;;  %v2166_v48 = vadd.f32 %v2165_v58, %v2085_v33  ;;  %v2181_v8 = vmul.f32 %v2763_v12, %v2763_v12  ;;  %v2595_v19 = vpack.c.bf16 %v2763_v12, %v2763_v12  ;;  %v2754_v15 = vpop.f32.mrb[15].mxu1 }
 0x147   : > { %v2167_v59 = vadd.f32 %v2763_v12, %v2166_v48  ;;  %v2187_v27 = vadd.f32 %v2186_v16, %v2180_v4  ;;  %2238 = vst.msk [vmem:[%s3359_s14 + $0x1c] sm:$0xf] %vm2230_vm6, %v2595_v19 }
 0x149   : > { %v2168_v30 = vrot.slane %v2167_v59, 4  ;;  %v2188_v50 = vadd.f32 %v2187_v27, %v2181_v8 }
 0x14b   : > { %v2169_v56 = vadd.f32 %v2168_v30, %v2167_v59  ;;  %v2189_v32 = vrot.slane %v2188_v50, 4 }
 0x14d   : > { %v2170_v57 = vrot.slane %v2169_v56, 2  ;;  %v2190_v51 = vadd.f32 %v2189_v32, %v2188_v50 }
 0x14f   : > { %v2171_v34 = vadd.f32 %v2170_v57, %v2169_v56  ;;  %v2191_v25 = vrot.slane %v2190_v51, 2 }
 0x151   : > { %v2172_v35 = vrot.slane %v2171_v34, 1  ;;  %v2192_v10 = vadd.f32 %v2191_v25, %v2190_v51 }
 0x153   : > { %v2173_v61 = vadd.f32 %v2172_v35, %v2171_v34  ;;  %v2193_v42 = vrot.slane %v2192_v10, 1 }
 0x155   : > { %v2194_v43 = vadd.f32 %v2193_v42, %v2192_v10  ;;  %2196 = vst.msk [vmem:[%s679_s18] sm:$0x1] %vm2195_vm7, %v2173_v61 }
 0x157   : > { %2197 = vst.msk [vmem:[%s679_s18 + $0x1] sm:$0x1] %vm2195_vm7, %v2194_v43 }
 0x158 PF: > { %s19_s29 = sadd.s32 1, %s2897_s29   ;;  %s3402_s27 = smov %s2893_s28 }
 0x159   : > { %p16_p5 = scmp.ge.s32.totalorder %s19_s29, 4   ;;  %s3403_s28 = smov %s3405_s30 }
 0x15b   :  { %18 = sbr.rel (!%p16_p5) target bundleno = 2 (0x2), region = 113 }

</bundles_post_ra>
